<compile_context>
chip_gen: v5e
topology: v5e:2x2
jax: 0.10.0
libtpu: 0.0.40
codegen_flags: <defaults>
</compile_context>

<pallas_src>
import jax
import jax.numpy as jnp
from jax.experimental import pallas as pl
from jax.experimental.pallas import tpu as pltpu


# ---------------------------------------------------------------------------
# Pallas kernel
# ---------------------------------------------------------------------------
def _sigmoid(x):
    # tanh-based sigmoid: one EUP op + two VALU ops (guaranteed Mosaic lowering).
    return 0.5 * jnp.tanh(0.5 * x) + 0.5


def _aggregate_kernel(sc_ref, ref_ref, src_ref, w1_ref, out_ref):
    """One grid step = one batch b, one hw tile, one block of d_blk depth planes.

    sc_ref : SMEM (4,)               [bn_scale, bn_shift, conv2_w, conv2_b]
    ref_ref: VMEM (1, Cg, G, hw)      softmax(ref) probabilities, f32
    src_ref: VMEM (V, 1, Cg, G, d_blk*hw)  warped source volumes (bf16/f32 storage)
    w1_ref : VMEM (G, hw)             Conv3d(G,1,1,bias=False) weight, lane-broadcast
    out_ref: VMEM (1, G, d_blk*hw)    aggregated volume, f32
    """
    V = src_ref.shape[0]
    Cg = ref_ref.shape[1]
    hw = ref_ref.shape[3]
    d_blk = src_ref.shape[4] // hw

    bn_scale = sc_ref[0]
    bn_shift = sc_ref[1]
    c2_w = sc_ref[2]
    c2_b = sc_ref[3]

    ref = ref_ref[0]                 # (Cg, G, hw) f32 probabilities (precomputed)
    w1 = w1_ref[...]                 # (G, hw)

    if Cg == 2:                      # hoisted out of the depth/view loops
        r1 = ref[1]
        rdiff = ref[0] - ref[1]

    for dd in range(d_blk):                          # static unroll (<= 8 planes)
        lo, hi = dd * hw, (dd + 1) * hw
        vol_sum = None
        w_sum = None
        for v in range(V):                           # static unroll over source views
            s = src_ref[v, 0, :, :, lo:hi].astype(jnp.float32)    # (Cg, G, hw)
            if Cg == 2:
                # softmax over two channels == sigmoid of the logit difference
                p0 = _sigmoid(s[0] - s[1])
                vol = r1 + p0 * rdiff                # = p0*r0 + (1-p0)*r1    (G, hw)
            else:
                m = jnp.max(s, axis=0, keepdims=True)
                e = jnp.exp(s - m)
                p = e * pl.reciprocal(jnp.sum(e, axis=0, keepdims=True))
                vol = jnp.sum(p * ref, axis=0)       # (G, hw)
            # depth_weight head: Conv3d(G,1,1,bias=False) + folded eval-BN + ReLU
            #                    + Conv3d(1,1,1) + Sigmoid
            y = jnp.sum(vol * w1, axis=0, keepdims=True)          # (1, hw)
            y = jnp.maximum(y * bn_scale + bn_shift, 0.0)
            y = y * c2_w + c2_b
            w = _sigmoid(y)                                       # (1, hw)
            vol_sum = w * vol if vol_sum is None else vol_sum + w * vol
            w_sum = w if w_sum is None else w_sum + w
        out_ref[0, :, lo:hi] = (vol_sum * pl.reciprocal(w_sum)).astype(out_ref.dtype)


# ---------------------------------------------------------------------------
# Wrapper
# ---------------------------------------------------------------------------
def _choose_tiling(HW, D, src_bytes_per_lane, max_block_bytes):
    """hw_blk: largest multiple of 128 dividing HW whose src block fits the budget.
    If hw_blk == HW the block additionally covers d_blk whole depth planes."""
    hw_blk = 128
    for cand in range(128, HW + 1, 128):
        if HW % cand == 0 and cand * src_bytes_per_lane <= max_block_bytes:
            hw_blk = cand
    d_blk = 1
    if hw_blk == HW:
        for cand in range(1, min(D, 8) + 1):          # cap in-kernel unroll at 8 planes
            if D % cand == 0 and cand * HW * src_bytes_per_lane <= max_block_bytes:
                d_blk = cand
    return d_blk, hw_blk


def vector_aggregate_pallas(scalars, ref_sm, src_vols, conv1_w, *, D, H, W,
                            max_block_bytes=2 << 20):
    """scalars : (4,) f32   [bn_scale, bn_shift, conv2_w, conv2_b]  -> SMEM prefetch
       ref_sm  : (B, Cg, G, H*W) f32   softmax over Cg (precomputed; depth/view invariant)
       src_vols: (V, B, Cg, G, D*H*W)  warped source volumes (bf16 storage recommended)
       conv1_w : (G,) f32              Conv3d(G, 1, 1, bias=False) weight
       returns : (B, G, D, H, W) f32
    """
    B, Cg, G, HW = ref_sm.shape
    V = src_vols.shape[0]
    assert HW == H * W
    assert src_vols.shape == (V, B, Cg, G, D * HW)
    # Lane constraint: fail loudly instead of silently dropping a spatial remainder.
    assert HW % 128 == 0, "H*W must be a multiple of 128 (pad spatially upstream)"

    d_blk, hw_blk = _choose_tiling(
        HW, D, V * Cg * G * src_vols.dtype.itemsize, max_block_bytes)
    n_hw = HW // hw_blk
    grid = (B, n_hw, D // d_blk)
    blk = d_blk * hw_blk

    # Conv1 weight, lane-broadcast once on the host (tiny; constant block index ->
    # DMA'd a single time; removes the degenerate (G, 1) lane-1 pipelined operand).
    w1_full = jnp.broadcast_to(conv1_w.astype(jnp.float32).reshape(G, 1), (G, hw_blk))

    if d_blk == 1:
        src_idx = lambda b, hi, di, sc: (0, b, 0, 0, di * n_hw + hi)
        out_idx = lambda b, hi, di, sc: (b, 0, di * n_hw + hi)
    else:  # block spans d_blk whole depth planes (hw_blk == HW, n_hw == 1)
        src_idx = lambda b, hi, di, sc: (0, b, 0, 0, di)
        out_idx = lambda b, hi, di, sc: (b, 0, di)

    # All grid axes are independent: the V reduction happens inside the kernel,
    # so no accumulator scratch / pl.when init-finalize is needed and every axis
    # can be sharded across TensorCores (>=2 parallel steps for v7x megacore).
    cp_kwargs = dict(dimension_semantics=("parallel", "parallel", "parallel"))
    vmem_est = 2 * (V * Cg * G * blk * src_vols.dtype.itemsize     # src (double-buffered)
                    + Cg * G * hw_blk * 4                          # ref
                    + G * blk * 4                                  # out
                    + G * hw_blk * 4)                              # conv1 weight
    if vmem_est > 12 * 1024 * 1024:   # only raise the scoped-VMEM limit when needed
        cp_kwargs["vmem_limit_bytes"] = int(min(2 * vmem_est + (4 << 20), 100 << 20))

    out_flat = pl.pallas_call(
        _aggregate_kernel,
        out_shape=jax.ShapeDtypeStruct((B, G, D * HW), jnp.float32),
        grid_spec=pltpu.PrefetchScalarGridSpec(
            num_scalar_prefetch=1,                      # scalars -> SMEM
            grid=grid,
            in_specs=[
                pl.BlockSpec((1, Cg, G, hw_blk),
                             lambda b, hi, di, sc: (b, 0, 0, hi)),
                pl.BlockSpec((V, 1, Cg, G, blk), src_idx),
                pl.BlockSpec((G, hw_blk),
                             lambda b, hi, di, sc: (0, 0)),
            ],
            out_specs=pl.BlockSpec((1, G, blk), out_idx),
        ),
        compiler_params=pltpu.CompilerParams(**cp_kwargs),
    )(scalars, ref_sm, src_vols, w1_full)

    return out_flat.reshape(B, G, D, H, W)


# ---------------------------------------------------------------------------
# Plain-JAX glue: homography warp (bilinear grid_sample gather, zero padding)
# ---------------------------------------------------------------------------
def homo_warping_jax(src_fea, src_proj, ref_proj, depth_hypos):
    """JAX port of MVSNet homo_warping (bilinear sampling, zeros padding).
    Data-dependent gather -> plain JAX."""
    B, C, H, W = src_fea.shape
    D = depth_hypos.shape[1]

    proj = jnp.einsum('bij,bjk->bik', src_proj, jnp.linalg.inv(ref_proj))
    rot = proj[:, :3, :3]
    trans = proj[:, :3, 3:4]                                           # (B, 3, 1)

    ys, xs = jnp.meshgrid(jnp.arange(H, dtype=jnp.float32),
                          jnp.arange(W, dtype=jnp.float32), indexing='ij')
    xyz = jnp.stack([xs.ravel(), ys.ravel(),
                     jnp.ones(H * W, jnp.float32)], axis=0)            # (3, HW)
    rot_xyz = jnp.einsum('bij,jn->bin', rot, xyz)                      # (B, 3, HW)
    proj_xyz = (rot_xyz[:, :, None, :] * depth_hypos[:, None, :, None]
                + trans[:, :, None, :])                                # (B, 3, D, HW)
    z = proj_xyz[:, 2]
    px = proj_xyz[:, 0] / z                                            # (B, D, HW)
    py = proj_xyz[:, 1] / z

    def sample_one(fea, px, py):                                       # fea (C, H, W)
        x0 = jnp.floor(px)
        y0 = jnp.floor(py)
        out = jnp.zeros((C,) + px.shape, jnp.float32)
        corners = [(x0,     y0,     (x0 + 1 - px) * (y0 + 1 - py)),
                   (x0 + 1, y0,     (px - x0) * (y0 + 1 - py)),
                   (x0,     y0 + 1, (x0 + 1 - px) * (py - y0)),
                   (x0 + 1, y0 + 1, (px - x0) * (py - y0))]
        for xc, yc, wgt in corners:
            valid = ((xc >= 0) & (xc <= W - 1) & (yc >= 0) & (yc <= H - 1))
            xi = jnp.clip(xc, 0, W - 1).astype(jnp.int32)
            yi = jnp.clip(yc, 0, H - 1).astype(jnp.int32)
            vals = fea[:, yi, xi]                                      # (C, D, HW)
            out = out + vals * (wgt * valid.astype(jnp.float32))[None]
        return out

    warped = jax.vmap(sample_one)(src_fea, px, py)                     # (B, C, D, HW)
    return warped.reshape(B, C, D, H, W)


# ---------------------------------------------------------------------------
# Pure-JAX reference (mirrors the PyTorch forward) for correctness checking
# ---------------------------------------------------------------------------
def reference_forward(ref_feature, warped_gcg, conv1_w, bn_scale, bn_shift,
                      conv2_w, conv2_b, G):
    """warped_gcg: (V, B, G, Cg, D, H, W) in the ORIGINAL (group-major) channel order."""
    B, C, H, W = ref_feature.shape
    V = warped_gcg.shape[0]
    D = warped_gcg.shape[4]
    Cg = C // G
    ref_vol = jnp.broadcast_to(ref_feature.reshape(B, G, Cg, 1, H, W),
                               (B, G, Cg, D, H, W))
    ref_sm = jax.nn.softmax(ref_vol, axis=2)
    vol_sum, w_sum = 0.0, 0.0
    for v in range(V):
        vol = jax.nn.softmax(warped_gcg[v], axis=2)
        vol = jnp.sum(vol * ref_sm, axis=2)                            # (B, G, D, H, W)
        y = jnp.einsum('g,bgdhw->bdhw', conv1_w, vol)[:, None]
        y = jnp.maximum(y * bn_scale + bn_shift, 0.0)
        y = y * conv2_w + conv2_b
        w = jax.nn.sigmoid(y)
        w_sum = w_sum + w
        vol_sum = vol_sum + w * vol
    return vol_sum / w_sum


# ---------------------------------------------------------------------------
if __name__ == "__main__":
    B, C, H, W = 2, 16, 16, 16
    G = 8                       # ngroups
    Cg = C // G
    D = 4                       # number of depth hypotheses
    V = 2                       # number of source views
    HW = H * W

    key = jax.random.PRNGKey(0)
    k_ref, k_src, k_w1, k_g, k_b, k_w2, k_b2 = jax.random.split(key, 7)

    ref_feature = jax.random.normal(k_ref, (B, C, H, W), jnp.float32)
    src_features = jax.random.normal(k_src, (V, B, C, H, W), jnp.float32)

    # simple projection matrices: identity intrinsics, per-view translation in x
    ref_proj = jnp.tile(jnp.eye(4, dtype=jnp.float32)[None], (B, 1, 1))
    src_projs = jnp.stack(
        [jnp.tile(jnp.eye(4, dtype=jnp.float32).at[0, 3].set(1.5 * (v + 1))[None],
                  (B, 1, 1)) for v in range(V)], axis=0)               # (V, B, 4, 4)
    depth_hypos = jnp.tile(jnp.linspace(1.0, 4.0, D, dtype=jnp.float32)[None], (B, 1))

    # depth_weight parameters (12 params, like the PyTorch module)
    conv1_w = 0.3 * jax.random.normal(k_w1, (G,), jnp.float32)         # Conv3d(G,1,1,bias=False)
    bn_gamma = 1.0 + 0.1 * jax.random.normal(k_g, (), jnp.float32)
    bn_beta = 0.1 * jax.random.normal(k_b, (), jnp.float32)
    bn_mean, bn_var, bn_eps = 0.0, 1.0, 1e-5                           # eval-mode BN stats
    conv2_w = 1.0 + 0.1 * jax.random.normal(k_w2, (), jnp.float32)
    conv2_b = 0.1 * jax.random.normal(k_b2, (), jnp.float32)
    # TODO(synk): training-mode BatchNorm (batch statistics) is not reproduced; eval-mode BN is folded.
    bn_scale = bn_gamma / jnp.sqrt(bn_var + bn_eps)
    bn_shift = bn_beta - bn_mean * bn_scale
    scalars = jnp.stack([bn_scale, bn_shift, conv2_w, conv2_b]).astype(jnp.float32)

    # --- glue for the kernel layout -----------------------------------------
    # Permute source-feature channels to (Cg, G) order BEFORE the warp so the big
    # warped volume only needs free reshapes afterwards (no host-side transpose).
    src_cgm = (src_features.reshape(V, B, G, Cg, H, W)
                           .transpose(0, 1, 3, 2, 4, 5)
                           .reshape(V, B, C, H, W))
    warped_cgm = jnp.stack([
        homo_warping_jax(src_cgm[v], src_projs[v], ref_proj, depth_hypos)
        for v in range(V)], axis=0)                         # (V, B, C', D, H, W) cg-major

    # bf16 storage for the dominant (memory-bound) input; f32 compute inside the kernel.
    src_vols = warped_cgm.reshape(V, B, Cg, G, D * HW).astype(jnp.bfloat16)

    # softmax(ref) over Cg is view- and depth-invariant: precompute once, (B, Cg, G, HW).
    ref_sm = jax.nn.softmax(
        ref_feature.reshape(B, G, Cg, HW).transpose(0, 2, 1, 3), axis=1)

    out = vector_aggregate_pallas(scalars, ref_sm, src_vols, conv1_w, D=D, H=H, W=W)
    out = jax.block_until_ready(out)                        # (B, G, D, H, W)

    # --- reference: original PyTorch layout/math, on the SAME bf16-stored warped
    # volumes the kernel consumed (storage-format change only; test-only transpose) ---
    warped_ref = (src_vols.astype(jnp.float32)
                          .reshape(V, B, Cg, G, D, H, W)
                          .transpose(0, 1, 3, 2, 4, 5, 6))  # (V, B, G, Cg, D, H, W)
    ref_out = reference_forward(ref_feature, warped_ref, conv1_w, bn_scale, bn_shift,
                                conv2_w, conv2_b, G)

    assert out.shape == (B, G, D, H, W)
    err = float(jnp.max(jnp.abs(out - ref_out)))
    assert jnp.allclose(out, ref_out, atol=1e-4, rtol=1e-4), err

    print("KERNEL_OK")
</pallas_src>

<mosaic_0001>
module attributes {stable_mosaic.version = 11 : i64} {
  func.func @_aggregate_kernel(%arg0: i32, %arg1: i32, %arg2: i32, %arg3: memref<4xf32, #tpu.memory_space<smem>>, %arg4: memref<1x2x8x256xf32, #tpu.memory_space<vmem>>, %arg5: memref<2x1x2x8x1024xbf16, #tpu.memory_space<vmem>>, %arg6: memref<8x256xf32, #tpu.memory_space<vmem>>, %arg7: memref<1x8x1024xf32, #tpu.memory_space<vmem>>) attributes {dimension_semantics = [#tpu.dimension_semantics<parallel>, #tpu.dimension_semantics<parallel>, #tpu.dimension_semantics<parallel>], iteration_bounds = array<i64: 2, 1, 1>, scalar_prefetch = 1 : i64, scratch_operands = 0 : i64, tpu.core_type = #tpu.core_type<tc>, window_params = [{transform_indices = @transform_0, window_bounds = array<i64: 1, 2, 8, 256>}, {transform_indices = @transform_1, window_bounds = array<i64: 2, 1, 2, 8, 1024>}, {pipeline_mode = #tpu.pipeline_mode<synchronous>, transform_indices = @transform_2, window_bounds = array<i64: 8, 256>}, {transform_indices = @transform_3, window_bounds = array<i64: 1, 8, 1024>}]} {
    %c0 = arith.constant 0 : index
    %0 = memref.load %arg3[%c0] : memref<4xf32, #tpu.memory_space<smem>>
    %c1 = arith.constant 1 : index
    %1 = memref.load %arg3[%c1] : memref<4xf32, #tpu.memory_space<smem>>
    %c2 = arith.constant 2 : index
    %2 = memref.load %arg3[%c2] : memref<4xf32, #tpu.memory_space<smem>>
    %c3 = arith.constant 3 : index
    %3 = memref.load %arg3[%c3] : memref<4xf32, #tpu.memory_space<smem>>
    %c0_0 = arith.constant 0 : index
    %c0_1 = arith.constant 0 : index
    %c0_2 = arith.constant 0 : index
    %c0_3 = arith.constant 0 : index
    %4 = vector.load %arg4[%c0_0, %c0_1, %c0_2, %c0_3] : memref<1x2x8x256xf32, #tpu.memory_space<vmem>>, vector<1x2x8x256xf32>
    %5 = vector.shape_cast %4 : vector<1x2x8x256xf32> to vector<2x8x256xf32>
    %c0_4 = arith.constant 0 : index
    %c0_5 = arith.constant 0 : index
    %6 = vector.load %arg6[%c0_4, %c0_5] : memref<8x256xf32, #tpu.memory_space<vmem>>, vector<8x256xf32>
    %7 = vector.extract_strided_slice %5 {offsets = [1, 0, 0], sizes = [1, 8, 256], strides = [1, 1, 1]} : vector<2x8x256xf32> to vector<1x8x256xf32>
    %8 = vector.shape_cast %7 : vector<1x8x256xf32> to vector<8x256xf32>
    %9 = vector.extract_strided_slice %5 {offsets = [0, 0, 0], sizes = [1, 8, 256], strides = [1, 1, 1]} : vector<2x8x256xf32> to vector<1x8x256xf32>
    %10 = vector.shape_cast %9 : vector<1x8x256xf32> to vector<8x256xf32>
    %11 = vector.extract_strided_slice %5 {offsets = [1, 0, 0], sizes = [1, 8, 256], strides = [1, 1, 1]} : vector<2x8x256xf32> to vector<1x8x256xf32>
    %12 = vector.shape_cast %11 : vector<1x8x256xf32> to vector<8x256xf32>
    %13 = arith.subf %10, %12 : vector<8x256xf32>
    %c0_6 = arith.constant 0 : index
    %c0_7 = arith.constant 0 : index
    %c0_8 = arith.constant 0 : index
    %c0_9 = arith.constant 0 : index
    %c0_10 = arith.constant 0 : index
    %14 = vector.load %arg5[%c0_6, %c0_7, %c0_8, %c0_9, %c0_10] : memref<2x1x2x8x1024xbf16, #tpu.memory_space<vmem>>, vector<1x1x2x8x256xbf16>
    %15 = vector.shape_cast %14 : vector<1x1x2x8x256xbf16> to vector<2x8x256xbf16>
    %16 = arith.extf %15 : vector<2x8x256xbf16> to vector<2x8x256xf32>
    %17 = vector.extract_strided_slice %16 {offsets = [0, 0, 0], sizes = [1, 8, 256], strides = [1, 1, 1]} : vector<2x8x256xf32> to vector<1x8x256xf32>
    %18 = vector.shape_cast %17 : vector<1x8x256xf32> to vector<8x256xf32>
    %19 = vector.extract_strided_slice %16 {offsets = [1, 0, 0], sizes = [1, 8, 256], strides = [1, 1, 1]} : vector<2x8x256xf32> to vector<1x8x256xf32>
    %20 = vector.shape_cast %19 : vector<1x8x256xf32> to vector<8x256xf32>
    %21 = arith.subf %18, %20 : vector<8x256xf32>
    %cst = arith.constant 5.000000e-01 : f32
    %22 = vector.broadcast %cst : f32 to vector<8x256xf32>
    %23 = arith.mulf %22, %21 : vector<8x256xf32>
    %24 = math.tanh %23 : vector<8x256xf32>
    %cst_11 = arith.constant 5.000000e-01 : f32
    %25 = vector.broadcast %cst_11 : f32 to vector<8x256xf32>
    %26 = arith.mulf %25, %24 : vector<8x256xf32>
    %cst_12 = arith.constant 5.000000e-01 : f32
    %27 = vector.broadcast %cst_12 : f32 to vector<8x256xf32>
    %28 = arith.addf %26, %27 : vector<8x256xf32>
    %29 = arith.mulf %28, %13 : vector<8x256xf32>
    %30 = arith.addf %8, %29 : vector<8x256xf32>
    %31 = arith.mulf %30, %6 : vector<8x256xf32>
    %cst_13 = arith.constant dense<0.000000e+00> : vector<256xf32>
    %32 = vector.multi_reduction <add>, %31, %cst_13 [0] : vector<8x256xf32> to vector<256xf32>
    %33 = vector.shape_cast %32 : vector<256xf32> to vector<1x256xf32>
    %34 = vector.broadcast %0 : f32 to vector<1x256xf32>
    %35 = arith.mulf %33, %34 : vector<1x256xf32>
    %36 = vector.broadcast %1 : f32 to vector<1x256xf32>
    %37 = arith.addf %35, %36 : vector<1x256xf32>
    %cst_14 = arith.constant 0.000000e+00 : f32
    %38 = vector.broadcast %cst_14 : f32 to vector<1x256xf32>
    %39 = arith.maximumf %37, %38 : vector<1x256xf32>
    %40 = vector.broadcast %2 : f32 to vector<1x256xf32>
    %41 = arith.mulf %39, %40 : vector<1x256xf32>
    %42 = vector.broadcast %3 : f32 to vector<1x256xf32>
    %43 = arith.addf %41, %42 : vector<1x256xf32>
    %cst_15 = arith.constant 5.000000e-01 : f32
    %44 = vector.broadcast %cst_15 : f32 to vector<1x256xf32>
    %45 = arith.mulf %44, %43 : vector<1x256xf32>
    %46 = math.tanh %45 : vector<1x256xf32>
    %cst_16 = arith.constant 5.000000e-01 : f32
    %47 = vector.broadcast %cst_16 : f32 to vector<1x256xf32>
    %48 = arith.mulf %47, %46 : vector<1x256xf32>
    %cst_17 = arith.constant 5.000000e-01 : f32
    %49 = vector.broadcast %cst_17 : f32 to vector<1x256xf32>
    %50 = arith.addf %48, %49 : vector<1x256xf32>
    %51 = vector.broadcast %50 : vector<1x256xf32> to vector<8x256xf32>
    %52 = arith.mulf %51, %30 : vector<8x256xf32>
    %c1_18 = arith.constant 1 : index
    %c0_19 = arith.constant 0 : index
    %c0_20 = arith.constant 0 : index
    %c0_21 = arith.constant 0 : index
    %c0_22 = arith.constant 0 : index
    %53 = vector.load %arg5[%c1_18, %c0_19, %c0_20, %c0_21, %c0_22] : memref<2x1x2x8x1024xbf16, #tpu.memory_space<vmem>>, vector<1x1x2x8x256xbf16>
    %54 = vector.shape_cast %53 : vector<1x1x2x8x256xbf16> to vector<2x8x256xbf16>
    %55 = arith.extf %54 : vector<2x8x256xbf16> to vector<2x8x256xf32>
    %56 = vector.extract_strided_slice %55 {offsets = [0, 0, 0], sizes = [1, 8, 256], strides = [1, 1, 1]} : vector<2x8x256xf32> to vector<1x8x256xf32>
    %57 = vector.shape_cast %56 : vector<1x8x256xf32> to vector<8x256xf32>
    %58 = vector.extract_strided_slice %55 {offsets = [1, 0, 0], sizes = [1, 8, 256], strides = [1, 1, 1]} : vector<2x8x256xf32> to vector<1x8x256xf32>
    %59 = vector.shape_cast %58 : vector<1x8x256xf32> to vector<8x256xf32>
    %60 = arith.subf %57, %59 : vector<8x256xf32>
    %cst_23 = arith.constant 5.000000e-01 : f32
    %61 = vector.broadcast %cst_23 : f32 to vector<8x256xf32>
    %62 = arith.mulf %61, %60 : vector<8x256xf32>
    %63 = math.tanh %62 : vector<8x256xf32>
    %cst_24 = arith.constant 5.000000e-01 : f32
    %64 = vector.broadcast %cst_24 : f32 to vector<8x256xf32>
    %65 = arith.mulf %64, %63 : vector<8x256xf32>
    %cst_25 = arith.constant 5.000000e-01 : f32
    %66 = vector.broadcast %cst_25 : f32 to vector<8x256xf32>
    %67 = arith.addf %65, %66 : vector<8x256xf32>
    %68 = arith.mulf %67, %13 : vector<8x256xf32>
    %69 = arith.addf %8, %68 : vector<8x256xf32>
    %70 = arith.mulf %69, %6 : vector<8x256xf32>
    %cst_26 = arith.constant dense<0.000000e+00> : vector<256xf32>
    %71 = vector.multi_reduction <add>, %70, %cst_26 [0] : vector<8x256xf32> to vector<256xf32>
    %72 = vector.shape_cast %71 : vector<256xf32> to vector<1x256xf32>
    %73 = vector.broadcast %0 : f32 to vector<1x256xf32>
    %74 = arith.mulf %72, %73 : vector<1x256xf32>
    %75 = vector.broadcast %1 : f32 to vector<1x256xf32>
    %76 = arith.addf %74, %75 : vector<1x256xf32>
    %cst_27 = arith.constant 0.000000e+00 : f32
    %77 = vector.broadcast %cst_27 : f32 to vector<1x256xf32>
    %78 = arith.maximumf %76, %77 : vector<1x256xf32>
    %79 = vector.broadcast %2 : f32 to vector<1x256xf32>
    %80 = arith.mulf %78, %79 : vector<1x256xf32>
    %81 = vector.broadcast %3 : f32 to vector<1x256xf32>
    %82 = arith.addf %80, %81 : vector<1x256xf32>
    %cst_28 = arith.constant 5.000000e-01 : f32
    %83 = vector.broadcast %cst_28 : f32 to vector<1x256xf32>
    %84 = arith.mulf %83, %82 : vector<1x256xf32>
    %85 = math.tanh %84 : vector<1x256xf32>
    %cst_29 = arith.constant 5.000000e-01 : f32
    %86 = vector.broadcast %cst_29 : f32 to vector<1x256xf32>
    %87 = arith.mulf %86, %85 : vector<1x256xf32>
    %cst_30 = arith.constant 5.000000e-01 : f32
    %88 = vector.broadcast %cst_30 : f32 to vector<1x256xf32>
    %89 = arith.addf %87, %88 : vector<1x256xf32>
    %90 = vector.broadcast %89 : vector<1x256xf32> to vector<8x256xf32>
    %91 = arith.mulf %90, %69 : vector<8x256xf32>
    %92 = arith.addf %52, %91 : vector<8x256xf32>
    %93 = arith.addf %50, %89 : vector<1x256xf32>
    %94 = tpu.reciprocal %93 : vector<1x256xf32> -> vector<1x256xf32>
    %95 = vector.broadcast %94 : vector<1x256xf32> to vector<8x256xf32>
    %96 = arith.mulf %92, %95 : vector<8x256xf32>
    %c0_31 = arith.constant 0 : index
    %c0_32 = arith.constant 0 : index
    %c0_33 = arith.constant 0 : index
    %97 = vector.load %arg7[%c0_31, %c0_32, %c0_33] : memref<1x8x1024xf32, #tpu.memory_space<vmem>>, vector<1x8x256xf32>
    %98 = vector.shape_cast %97 : vector<1x8x256xf32> to vector<8x256xf32>
    %99 = vector.shape_cast %96 : vector<8x256xf32> to vector<1x8x256xf32>
    tpu.vector_store %arg7[%c0_31, %c0_32, %c0_33], %99 {strides = array<i32>} : memref<1x8x1024xf32, #tpu.memory_space<vmem>>, vector<1x8x256xf32>,
    %c0_34 = arith.constant 0 : index
    %c0_35 = arith.constant 0 : index
    %c0_36 = arith.constant 0 : index
    %c0_37 = arith.constant 0 : index
    %c256 = arith.constant 256 : index
    %100 = vector.load %arg5[%c0_34, %c0_35, %c0_36, %c0_37, %c256] : memref<2x1x2x8x1024xbf16, #tpu.memory_space<vmem>>, vector<1x1x2x8x256xbf16>
    %101 = vector.shape_cast %100 : vector<1x1x2x8x256xbf16> to vector<2x8x256xbf16>
    %102 = arith.extf %101 : vector<2x8x256xbf16> to vector<2x8x256xf32>
    %103 = vector.extract_strided_slice %102 {offsets = [0, 0, 0], sizes = [1, 8, 256], strides = [1, 1, 1]} : vector<2x8x256xf32> to vector<1x8x256xf32>
    %104 = vector.shape_cast %103 : vector<1x8x256xf32> to vector<8x256xf32>
    %105 = vector.extract_strided_slice %102 {offsets = [1, 0, 0], sizes = [1, 8, 256], strides = [1, 1, 1]} : vector<2x8x256xf32> to vector<1x8x256xf32>
    %106 = vector.shape_cast %105 : vector<1x8x256xf32> to vector<8x256xf32>
    %107 = arith.subf %104, %106 : vector<8x256xf32>
    %cst_38 = arith.constant 5.000000e-01 : f32
    %108 = vector.broadcast %cst_38 : f32 to vector<8x256xf32>
    %109 = arith.mulf %108, %107 : vector<8x256xf32>
    %110 = math.tanh %109 : vector<8x256xf32>
    %cst_39 = arith.constant 5.000000e-01 : f32
    %111 = vector.broadcast %cst_39 : f32 to vector<8x256xf32>
    %112 = arith.mulf %111, %110 : vector<8x256xf32>
    %cst_40 = arith.constant 5.000000e-01 : f32
    %113 = vector.broadcast %cst_40 : f32 to vector<8x256xf32>
    %114 = arith.addf %112, %113 : vector<8x256xf32>
    %115 = arith.mulf %114, %13 : vector<8x256xf32>
    %116 = arith.addf %8, %115 : vector<8x256xf32>
    %117 = arith.mulf %116, %6 : vector<8x256xf32>
    %cst_41 = arith.constant dense<0.000000e+00> : vector<256xf32>
    %118 = vector.multi_reduction <add>, %117, %cst_41 [0] : vector<8x256xf32> to vector<256xf32>
    %119 = vector.shape_cast %118 : vector<256xf32> to vector<1x256xf32>
    %120 = vector.broadcast %0 : f32 to vector<1x256xf32>
    %121 = arith.mulf %119, %120 : vector<1x256xf32>
    %122 = vector.broadcast %1 : f32 to vector<1x256xf32>
    %123 = arith.addf %121, %122 : vector<1x256xf32>
    %cst_42 = arith.constant 0.000000e+00 : f32
    %124 = vector.broadcast %cst_42 : f32 to vector<1x256xf32>
    %125 = arith.maximumf %123, %124 : vector<1x256xf32>
    %126 = vector.broadcast %2 : f32 to vector<1x256xf32>
    %127 = arith.mulf %125, %126 : vector<1x256xf32>
    %128 = vector.broadcast %3 : f32 to vector<1x256xf32>
    %129 = arith.addf %127, %128 : vector<1x256xf32>
    %cst_43 = arith.constant 5.000000e-01 : f32
    %130 = vector.broadcast %cst_43 : f32 to vector<1x256xf32>
    %131 = arith.mulf %130, %129 : vector<1x256xf32>
    %132 = math.tanh %131 : vector<1x256xf32>
    %cst_44 = arith.constant 5.000000e-01 : f32
    %133 = vector.broadcast %cst_44 : f32 to vector<1x256xf32>
    %134 = arith.mulf %133, %132 : vector<1x256xf32>
    %cst_45 = arith.constant 5.000000e-01 : f32
    %135 = vector.broadcast %cst_45 : f32 to vector<1x256xf32>
    %136 = arith.addf %134, %135 : vector<1x256xf32>
    %137 = vector.broadcast %136 : vector<1x256xf32> to vector<8x256xf32>
    %138 = arith.mulf %137, %116 : vector<8x256xf32>
    %c1_46 = arith.constant 1 : index
    %c0_47 = arith.constant 0 : index
    %c0_48 = arith.constant 0 : index
    %c0_49 = arith.constant 0 : index
    %c256_50 = arith.constant 256 : index
    %139 = vector.load %arg5[%c1_46, %c0_47, %c0_48, %c0_49, %c256_50] : memref<2x1x2x8x1024xbf16, #tpu.memory_space<vmem>>, vector<1x1x2x8x256xbf16>
    %140 = vector.shape_cast %139 : vector<1x1x2x8x256xbf16> to vector<2x8x256xbf16>
    %141 = arith.extf %140 : vector<2x8x256xbf16> to vector<2x8x256xf32>
    %142 = vector.extract_strided_slice %141 {offsets = [0, 0, 0], sizes = [1, 8, 256], strides = [1, 1, 1]} : vector<2x8x256xf32> to vector<1x8x256xf32>
    %143 = vector.shape_cast %142 : vector<1x8x256xf32> to vector<8x256xf32>
    %144 = vector.extract_strided_slice %141 {offsets = [1, 0, 0], sizes = [1, 8, 256], strides = [1, 1, 1]} : vector<2x8x256xf32> to vector<1x8x256xf32>
    %145 = vector.shape_cast %144 : vector<1x8x256xf32> to vector<8x256xf32>
    %146 = arith.subf %143, %145 : vector<8x256xf32>
    %cst_51 = arith.constant 5.000000e-01 : f32
    %147 = vector.broadcast %cst_51 : f32 to vector<8x256xf32>
    %148 = arith.mulf %147, %146 : vector<8x256xf32>
    %149 = math.tanh %148 : vector<8x256xf32>
    %cst_52 = arith.constant 5.000000e-01 : f32
    %150 = vector.broadcast %cst_52 : f32 to vector<8x256xf32>
    %151 = arith.mulf %150, %149 : vector<8x256xf32>
    %cst_53 = arith.constant 5.000000e-01 : f32
    %152 = vector.broadcast %cst_53 : f32 to vector<8x256xf32>
    %153 = arith.addf %151, %152 : vector<8x256xf32>
    %154 = arith.mulf %153, %13 : vector<8x256xf32>
    %155 = arith.addf %8, %154 : vector<8x256xf32>
    %156 = arith.mulf %155, %6 : vector<8x256xf32>
    %cst_54 = arith.constant dense<0.000000e+00> : vector<256xf32>
    %157 = vector.multi_reduction <add>, %156, %cst_54 [0] : vector<8x256xf32> to vector<256xf32>
    %158 = vector.shape_cast %157 : vector<256xf32> to vector<1x256xf32>
    %159 = vector.broadcast %0 : f32 to vector<1x256xf32>
    %160 = arith.mulf %158, %159 : vector<1x256xf32>
    %161 = vector.broadcast %1 : f32 to vector<1x256xf32>
    %162 = arith.addf %160, %161 : vector<1x256xf32>
    %cst_55 = arith.constant 0.000000e+00 : f32
    %163 = vector.broadcast %cst_55 : f32 to vector<1x256xf32>
    %164 = arith.maximumf %162, %163 : vector<1x256xf32>
    %165 = vector.broadcast %2 : f32 to vector<1x256xf32>
    %166 = arith.mulf %164, %165 : vector<1x256xf32>
    %167 = vector.broadcast %3 : f32 to vector<1x256xf32>
    %168 = arith.addf %166, %167 : vector<1x256xf32>
    %cst_56 = arith.constant 5.000000e-01 : f32
    %169 = vector.broadcast %cst_56 : f32 to vector<1x256xf32>
    %170 = arith.mulf %169, %168 : vector<1x256xf32>
    %171 = math.tanh %170 : vector<1x256xf32>
    %cst_57 = arith.constant 5.000000e-01 : f32
    %172 = vector.broadcast %cst_57 : f32 to vector<1x256xf32>
    %173 = arith.mulf %172, %171 : vector<1x256xf32>
    %cst_58 = arith.constant 5.000000e-01 : f32
    %174 = vector.broadcast %cst_58 : f32 to vector<1x256xf32>
    %175 = arith.addf %173, %174 : vector<1x256xf32>
    %176 = vector.broadcast %175 : vector<1x256xf32> to vector<8x256xf32>
    %177 = arith.mulf %176, %155 : vector<8x256xf32>
    %178 = arith.addf %138, %177 : vector<8x256xf32>
    %179 = arith.addf %136, %175 : vector<1x256xf32>
    %180 = tpu.reciprocal %179 : vector<1x256xf32> -> vector<1x256xf32>
    %181 = vector.broadcast %180 : vector<1x256xf32> to vector<8x256xf32>
    %182 = arith.mulf %178, %181 : vector<8x256xf32>
    %c0_59 = arith.constant 0 : index
    %c0_60 = arith.constant 0 : index
    %c256_61 = arith.constant 256 : index
    %183 = vector.load %arg7[%c0_59, %c0_60, %c256_61] : memref<1x8x1024xf32, #tpu.memory_space<vmem>>, vector<1x8x256xf32>
    %184 = vector.shape_cast %183 : vector<1x8x256xf32> to vector<8x256xf32>
    %185 = vector.shape_cast %182 : vector<8x256xf32> to vector<1x8x256xf32>
    tpu.vector_store %arg7[%c0_59, %c0_60, %c256_61], %185 {strides = array<i32>} : memref<1x8x1024xf32, #tpu.memory_space<vmem>>, vector<1x8x256xf32>,
    %c0_62 = arith.constant 0 : index
    %c0_63 = arith.constant 0 : index
    %c0_64 = arith.constant 0 : index
    %c0_65 = arith.constant 0 : index
    %c512 = arith.constant 512 : index
    %186 = vector.load %arg5[%c0_62, %c0_63, %c0_64, %c0_65, %c512] : memref<2x1x2x8x1024xbf16, #tpu.memory_space<vmem>>, vector<1x1x2x8x256xbf16>
    %187 = vector.shape_cast %186 : vector<1x1x2x8x256xbf16> to vector<2x8x256xbf16>
    %188 = arith.extf %187 : vector<2x8x256xbf16> to vector<2x8x256xf32>
    %189 = vector.extract_strided_slice %188 {offsets = [0, 0, 0], sizes = [1, 8, 256], strides = [1, 1, 1]} : vector<2x8x256xf32> to vector<1x8x256xf32>
    %190 = vector.shape_cast %189 : vector<1x8x256xf32> to vector<8x256xf32>
    %191 = vector.extract_strided_slice %188 {offsets = [1, 0, 0], sizes = [1, 8, 256], strides = [1, 1, 1]} : vector<2x8x256xf32> to vector<1x8x256xf32>
    %192 = vector.shape_cast %191 : vector<1x8x256xf32> to vector<8x256xf32>
    %193 = arith.subf %190, %192 : vector<8x256xf32>
    %cst_66 = arith.constant 5.000000e-01 : f32
    %194 = vector.broadcast %cst_66 : f32 to vector<8x256xf32>
    %195 = arith.mulf %194, %193 : vector<8x256xf32>
    %196 = math.tanh %195 : vector<8x256xf32>
    %cst_67 = arith.constant 5.000000e-01 : f32
    %197 = vector.broadcast %cst_67 : f32 to vector<8x256xf32>
    %198 = arith.mulf %197, %196 : vector<8x256xf32>
    %cst_68 = arith.constant 5.000000e-01 : f32
    %199 = vector.broadcast %cst_68 : f32 to vector<8x256xf32>
    %200 = arith.addf %198, %199 : vector<8x256xf32>
    %201 = arith.mulf %200, %13 : vector<8x256xf32>
    %202 = arith.addf %8, %201 : vector<8x256xf32>
    %203 = arith.mulf %202, %6 : vector<8x256xf32>
    %cst_69 = arith.constant dense<0.000000e+00> : vector<256xf32>
    %204 = vector.multi_reduction <add>, %203, %cst_69 [0] : vector<8x256xf32> to vector<256xf32>
    %205 = vector.shape_cast %204 : vector<256xf32> to vector<1x256xf32>
    %206 = vector.broadcast %0 : f32 to vector<1x256xf32>
    %207 = arith.mulf %205, %206 : vector<1x256xf32>
    %208 = vector.broadcast %1 : f32 to vector<1x256xf32>
    %209 = arith.addf %207, %208 : vector<1x256xf32>
    %cst_70 = arith.constant 0.000000e+00 : f32
    %210 = vector.broadcast %cst_70 : f32 to vector<1x256xf32>
    %211 = arith.maximumf %209, %210 : vector<1x256xf32>
    %212 = vector.broadcast %2 : f32 to vector<1x256xf32>
    %213 = arith.mulf %211, %212 : vector<1x256xf32>
    %214 = vector.broadcast %3 : f32 to vector<1x256xf32>
    %215 = arith.addf %213, %214 : vector<1x256xf32>
    %cst_71 = arith.constant 5.000000e-01 : f32
    %216 = vector.broadcast %cst_71 : f32 to vector<1x256xf32>
    %217 = arith.mulf %216, %215 : vector<1x256xf32>
    %218 = math.tanh %217 : vector<1x256xf32>
    %cst_72 = arith.constant 5.000000e-01 : f32
    %219 = vector.broadcast %cst_72 : f32 to vector<1x256xf32>
    %220 = arith.mulf %219, %218 : vector<1x256xf32>
    %cst_73 = arith.constant 5.000000e-01 : f32
    %221 = vector.broadcast %cst_73 : f32 to vector<1x256xf32>
    %222 = arith.addf %220, %221 : vector<1x256xf32>
    %223 = vector.broadcast %222 : vector<1x256xf32> to vector<8x256xf32>
    %224 = arith.mulf %223, %202 : vector<8x256xf32>
    %c1_74 = arith.constant 1 : index
    %c0_75 = arith.constant 0 : index
    %c0_76 = arith.constant 0 : index
    %c0_77 = arith.constant 0 : index
    %c512_78 = arith.constant 512 : index
    %225 = vector.load %arg5[%c1_74, %c0_75, %c0_76, %c0_77, %c512_78] : memref<2x1x2x8x1024xbf16, #tpu.memory_space<vmem>>, vector<1x1x2x8x256xbf16>
    %226 = vector.shape_cast %225 : vector<1x1x2x8x256xbf16> to vector<2x8x256xbf16>
    %227 = arith.extf %226 : vector<2x8x256xbf16> to vector<2x8x256xf32>
    %228 = vector.extract_strided_slice %227 {offsets = [0, 0, 0], sizes = [1, 8, 256], strides = [1, 1, 1]} : vector<2x8x256xf32> to vector<1x8x256xf32>
    %229 = vector.shape_cast %228 : vector<1x8x256xf32> to vector<8x256xf32>
    %230 = vector.extract_strided_slice %227 {offsets = [1, 0, 0], sizes = [1, 8, 256], strides = [1, 1, 1]} : vector<2x8x256xf32> to vector<1x8x256xf32>
    %231 = vector.shape_cast %230 : vector<1x8x256xf32> to vector<8x256xf32>
    %232 = arith.subf %229, %231 : vector<8x256xf32>
    %cst_79 = arith.constant 5.000000e-01 : f32
    %233 = vector.broadcast %cst_79 : f32 to vector<8x256xf32>
    %234 = arith.mulf %233, %232 : vector<8x256xf32>
    %235 = math.tanh %234 : vector<8x256xf32>
    %cst_80 = arith.constant 5.000000e-01 : f32
    %236 = vector.broadcast %cst_80 : f32 to vector<8x256xf32>
    %237 = arith.mulf %236, %235 : vector<8x256xf32>
    %cst_81 = arith.constant 5.000000e-01 : f32
    %238 = vector.broadcast %cst_81 : f32 to vector<8x256xf32>
    %239 = arith.addf %237, %238 : vector<8x256xf32>
    %240 = arith.mulf %239, %13 : vector<8x256xf32>
    %241 = arith.addf %8, %240 : vector<8x256xf32>
    %242 = arith.mulf %241, %6 : vector<8x256xf32>
    %cst_82 = arith.constant dense<0.000000e+00> : vector<256xf32>
    %243 = vector.multi_reduction <add>, %242, %cst_82 [0] : vector<8x256xf32> to vector<256xf32>
    %244 = vector.shape_cast %243 : vector<256xf32> to vector<1x256xf32>
    %245 = vector.broadcast %0 : f32 to vector<1x256xf32>
    %246 = arith.mulf %244, %245 : vector<1x256xf32>
    %247 = vector.broadcast %1 : f32 to vector<1x256xf32>
    %248 = arith.addf %246, %247 : vector<1x256xf32>
    %cst_83 = arith.constant 0.000000e+00 : f32
    %249 = vector.broadcast %cst_83 : f32 to vector<1x256xf32>
    %250 = arith.maximumf %248, %249 : vector<1x256xf32>
    %251 = vector.broadcast %2 : f32 to vector<1x256xf32>
    %252 = arith.mulf %250, %251 : vector<1x256xf32>
    %253 = vector.broadcast %3 : f32 to vector<1x256xf32>
    %254 = arith.addf %252, %253 : vector<1x256xf32>
    %cst_84 = arith.constant 5.000000e-01 : f32
    %255 = vector.broadcast %cst_84 : f32 to vector<1x256xf32>
    %256 = arith.mulf %255, %254 : vector<1x256xf32>
    %257 = math.tanh %256 : vector<1x256xf32>
    %cst_85 = arith.constant 5.000000e-01 : f32
    %258 = vector.broadcast %cst_85 : f32 to vector<1x256xf32>
    %259 = arith.mulf %258, %257 : vector<1x256xf32>
    %cst_86 = arith.constant 5.000000e-01 : f32
    %260 = vector.broadcast %cst_86 : f32 to vector<1x256xf32>
    %261 = arith.addf %259, %260 : vector<1x256xf32>
    %262 = vector.broadcast %261 : vector<1x256xf32> to vector<8x256xf32>
    %263 = arith.mulf %262, %241 : vector<8x256xf32>
    %264 = arith.addf %224, %263 : vector<8x256xf32>
    %265 = arith.addf %222, %261 : vector<1x256xf32>
    %266 = tpu.reciprocal %265 : vector<1x256xf32> -> vector<1x256xf32>
    %267 = vector.broadcast %266 : vector<1x256xf32> to vector<8x256xf32>
    %268 = arith.mulf %264, %267 : vector<8x256xf32>
    %c0_87 = arith.constant 0 : index
    %c0_88 = arith.constant 0 : index
    %c512_89 = arith.constant 512 : index
    %269 = vector.load %arg7[%c0_87, %c0_88, %c512_89] : memref<1x8x1024xf32, #tpu.memory_space<vmem>>, vector<1x8x256xf32>
    %270 = vector.shape_cast %269 : vector<1x8x256xf32> to vector<8x256xf32>
    %271 = vector.shape_cast %268 : vector<8x256xf32> to vector<1x8x256xf32>
    tpu.vector_store %arg7[%c0_87, %c0_88, %c512_89], %271 {strides = array<i32>} : memref<1x8x1024xf32, #tpu.memory_space<vmem>>, vector<1x8x256xf32>,
    %c0_90 = arith.constant 0 : index
    %c0_91 = arith.constant 0 : index
    %c0_92 = arith.constant 0 : index
    %c0_93 = arith.constant 0 : index
    %c768 = arith.constant 768 : index
    %272 = vector.load %arg5[%c0_90, %c0_91, %c0_92, %c0_93, %c768] : memref<2x1x2x8x1024xbf16, #tpu.memory_space<vmem>>, vector<1x1x2x8x256xbf16>
    %273 = vector.shape_cast %272 : vector<1x1x2x8x256xbf16> to vector<2x8x256xbf16>
    %274 = arith.extf %273 : vector<2x8x256xbf16> to vector<2x8x256xf32>
    %275 = vector.extract_strided_slice %274 {offsets = [0, 0, 0], sizes = [1, 8, 256], strides = [1, 1, 1]} : vector<2x8x256xf32> to vector<1x8x256xf32>
    %276 = vector.shape_cast %275 : vector<1x8x256xf32> to vector<8x256xf32>
    %277 = vector.extract_strided_slice %274 {offsets = [1, 0, 0], sizes = [1, 8, 256], strides = [1, 1, 1]} : vector<2x8x256xf32> to vector<1x8x256xf32>
    %278 = vector.shape_cast %277 : vector<1x8x256xf32> to vector<8x256xf32>
    %279 = arith.subf %276, %278 : vector<8x256xf32>
    %cst_94 = arith.constant 5.000000e-01 : f32
    %280 = vector.broadcast %cst_94 : f32 to vector<8x256xf32>
    %281 = arith.mulf %280, %279 : vector<8x256xf32>
    %282 = math.tanh %281 : vector<8x256xf32>
    %cst_95 = arith.constant 5.000000e-01 : f32
    %283 = vector.broadcast %cst_95 : f32 to vector<8x256xf32>
    %284 = arith.mulf %283, %282 : vector<8x256xf32>
    %cst_96 = arith.constant 5.000000e-01 : f32
    %285 = vector.broadcast %cst_96 : f32 to vector<8x256xf32>
    %286 = arith.addf %284, %285 : vector<8x256xf32>
    %287 = arith.mulf %286, %13 : vector<8x256xf32>
    %288 = arith.addf %8, %287 : vector<8x256xf32>
    %289 = arith.mulf %288, %6 : vector<8x256xf32>
    %cst_97 = arith.constant dense<0.000000e+00> : vector<256xf32>
    %290 = vector.multi_reduction <add>, %289, %cst_97 [0] : vector<8x256xf32> to vector<256xf32>
    %291 = vector.shape_cast %290 : vector<256xf32> to vector<1x256xf32>
    %292 = vector.broadcast %0 : f32 to vector<1x256xf32>
    %293 = arith.mulf %291, %292 : vector<1x256xf32>
    %294 = vector.broadcast %1 : f32 to vector<1x256xf32>
    %295 = arith.addf %293, %294 : vector<1x256xf32>
    %cst_98 = arith.constant 0.000000e+00 : f32
    %296 = vector.broadcast %cst_98 : f32 to vector<1x256xf32>
    %297 = arith.maximumf %295, %296 : vector<1x256xf32>
    %298 = vector.broadcast %2 : f32 to vector<1x256xf32>
    %299 = arith.mulf %297, %298 : vector<1x256xf32>
    %300 = vector.broadcast %3 : f32 to vector<1x256xf32>
    %301 = arith.addf %299, %300 : vector<1x256xf32>
    %cst_99 = arith.constant 5.000000e-01 : f32
    %302 = vector.broadcast %cst_99 : f32 to vector<1x256xf32>
    %303 = arith.mulf %302, %301 : vector<1x256xf32>
    %304 = math.tanh %303 : vector<1x256xf32>
    %cst_100 = arith.constant 5.000000e-01 : f32
    %305 = vector.broadcast %cst_100 : f32 to vector<1x256xf32>
    %306 = arith.mulf %305, %304 : vector<1x256xf32>
    %cst_101 = arith.constant 5.000000e-01 : f32
    %307 = vector.broadcast %cst_101 : f32 to vector<1x256xf32>
    %308 = arith.addf %306, %307 : vector<1x256xf32>
    %309 = vector.broadcast %308 : vector<1x256xf32> to vector<8x256xf32>
    %310 = arith.mulf %309, %288 : vector<8x256xf32>
    %c1_102 = arith.constant 1 : index
    %c0_103 = arith.constant 0 : index
    %c0_104 = arith.constant 0 : index
    %c0_105 = arith.constant 0 : index
    %c768_106 = arith.constant 768 : index
    %311 = vector.load %arg5[%c1_102, %c0_103, %c0_104, %c0_105, %c768_106] : memref<2x1x2x8x1024xbf16, #tpu.memory_space<vmem>>, vector<1x1x2x8x256xbf16>
    %312 = vector.shape_cast %311 : vector<1x1x2x8x256xbf16> to vector<2x8x256xbf16>
    %313 = arith.extf %312 : vector<2x8x256xbf16> to vector<2x8x256xf32>
    %314 = vector.extract_strided_slice %313 {offsets = [0, 0, 0], sizes = [1, 8, 256], strides = [1, 1, 1]} : vector<2x8x256xf32> to vector<1x8x256xf32>
    %315 = vector.shape_cast %314 : vector<1x8x256xf32> to vector<8x256xf32>
    %316 = vector.extract_strided_slice %313 {offsets = [1, 0, 0], sizes = [1, 8, 256], strides = [1, 1, 1]} : vector<2x8x256xf32> to vector<1x8x256xf32>
    %317 = vector.shape_cast %316 : vector<1x8x256xf32> to vector<8x256xf32>
    %318 = arith.subf %315, %317 : vector<8x256xf32>
    %cst_107 = arith.constant 5.000000e-01 : f32
    %319 = vector.broadcast %cst_107 : f32 to vector<8x256xf32>
    %320 = arith.mulf %319, %318 : vector<8x256xf32>
    %321 = math.tanh %320 : vector<8x256xf32>
    %cst_108 = arith.constant 5.000000e-01 : f32
    %322 = vector.broadcast %cst_108 : f32 to vector<8x256xf32>
    %323 = arith.mulf %322, %321 : vector<8x256xf32>
    %cst_109 = arith.constant 5.000000e-01 : f32
    %324 = vector.broadcast %cst_109 : f32 to vector<8x256xf32>
    %325 = arith.addf %323, %324 : vector<8x256xf32>
    %326 = arith.mulf %325, %13 : vector<8x256xf32>
    %327 = arith.addf %8, %326 : vector<8x256xf32>
    %328 = arith.mulf %327, %6 : vector<8x256xf32>
    %cst_110 = arith.constant dense<0.000000e+00> : vector<256xf32>
    %329 = vector.multi_reduction <add>, %328, %cst_110 [0] : vector<8x256xf32> to vector<256xf32>
    %330 = vector.shape_cast %329 : vector<256xf32> to vector<1x256xf32>
    %331 = vector.broadcast %0 : f32 to vector<1x256xf32>
    %332 = arith.mulf %330, %331 : vector<1x256xf32>
    %333 = vector.broadcast %1 : f32 to vector<1x256xf32>
    %334 = arith.addf %332, %333 : vector<1x256xf32>
    %cst_111 = arith.constant 0.000000e+00 : f32
    %335 = vector.broadcast %cst_111 : f32 to vector<1x256xf32>
    %336 = arith.maximumf %334, %335 : vector<1x256xf32>
    %337 = vector.broadcast %2 : f32 to vector<1x256xf32>
    %338 = arith.mulf %336, %337 : vector<1x256xf32>
    %339 = vector.broadcast %3 : f32 to vector<1x256xf32>
    %340 = arith.addf %338, %339 : vector<1x256xf32>
    %cst_112 = arith.constant 5.000000e-01 : f32
    %341 = vector.broadcast %cst_112 : f32 to vector<1x256xf32>
    %342 = arith.mulf %341, %340 : vector<1x256xf32>
    %343 = math.tanh %342 : vector<1x256xf32>
    %cst_113 = arith.constant 5.000000e-01 : f32
    %344 = vector.broadcast %cst_113 : f32 to vector<1x256xf32>
    %345 = arith.mulf %344, %343 : vector<1x256xf32>
    %cst_114 = arith.constant 5.000000e-01 : f32
    %346 = vector.broadcast %cst_114 : f32 to vector<1x256xf32>
    %347 = arith.addf %345, %346 : vector<1x256xf32>
    %348 = vector.broadcast %347 : vector<1x256xf32> to vector<8x256xf32>
    %349 = arith.mulf %348, %327 : vector<8x256xf32>
    %350 = arith.addf %310, %349 : vector<8x256xf32>
    %351 = arith.addf %308, %347 : vector<1x256xf32>
    %352 = tpu.reciprocal %351 : vector<1x256xf32> -> vector<1x256xf32>
    %353 = vector.broadcast %352 : vector<1x256xf32> to vector<8x256xf32>
    %354 = arith.mulf %350, %353 : vector<8x256xf32>
    %c0_115 = arith.constant 0 : index
    %c0_116 = arith.constant 0 : index
    %c768_117 = arith.constant 768 : index
    %355 = vector.load %arg7[%c0_115, %c0_116, %c768_117] : memref<1x8x1024xf32, #tpu.memory_space<vmem>>, vector<1x8x256xf32>
    %356 = vector.shape_cast %355 : vector<1x8x256xf32> to vector<8x256xf32>
    %357 = vector.shape_cast %354 : vector<8x256xf32> to vector<1x8x256xf32>
    tpu.vector_store %arg7[%c0_115, %c0_116, %c768_117], %357 {strides = array<i32>} : memref<1x8x1024xf32, #tpu.memory_space<vmem>>, vector<1x8x256xf32>,
    return
  }
  func.func @transform_0(%arg0: i32, %arg1: i32, %arg2: i32, %arg3: memref<4xf32, #tpu.memory_space<smem>>) -> (i32, i32, i32, i32) {
    %c0_i32 = arith.constant 0 : i32
    %c0_i32_0 = arith.constant 0 : i32
    %c0_i32_1 = arith.constant 0 : i32
    return %arg0, %c0_i32, %c0_i32_0, %arg1 : i32, i32, i32, i32
  }
  func.func @transform_1(%arg0: i32, %arg1: i32, %arg2: i32, %arg3: memref<4xf32, #tpu.memory_space<smem>>) -> (i32, i32, i32, i32, i32) {
    %c0_i32 = arith.constant 0 : i32
    %c0_i32_0 = arith.constant 0 : i32
    %c0_i32_1 = arith.constant 0 : i32
    %c0_i32_2 = arith.constant 0 : i32
    return %c0_i32, %arg0, %c0_i32_0, %c0_i32_1, %arg2 : i32, i32, i32, i32, i32
  }
  func.func @transform_2(%arg0: i32, %arg1: i32, %arg2: i32, %arg3: memref<4xf32, #tpu.memory_space<smem>>) -> (i32, i32) {
    %c0_i32 = arith.constant 0 : i32
    %c0_i32_0 = arith.constant 0 : i32
    %c0_i32_1 = arith.constant 0 : i32
    return %c0_i32, %c0_i32_0 : i32, i32
  }
  func.func @transform_3(%arg0: i32, %arg1: i32, %arg2: i32, %arg3: memref<4xf32, #tpu.memory_space<smem>>) -> (i32, i32, i32) {
    %c0_i32 = arith.constant 0 : i32
    %c0_i32_0 = arith.constant 0 : i32
    return %arg0, %c0_i32, %arg2 : i32, i32, i32
  }
}

</mosaic_0001>

<bundles_post_ra>
// kernel: tpu_custom_call.1
= control target key start
LH: loop header
LB: loop body
LE: loop exit
PB: predicated region body
PF: predicated region fallthrough
CT: control target
= control target key end

     0   :  { %s1411_s18 = smov [#allocation3]   ;;  %s2016_s0 = inlined_call_operand.hbm [shape: f32[4], index: 0, kind: input, shape index: {}]   ;;  %s2017_s1 = inlined_call_operand.hbm [shape: f32[2,2,8,256], index: 1, kind: input, shape index: {}]   ;;  %s2018_s2 = inlined_call_operand.hbm [shape: bf16[2,2,2,8,1024], index: 2, kind: input, shape index: {}]   ;;  %s2019_s3 = inlined_call_operand.hbm [shape: f32[8,256], index: 3, kind: input, shape index: {}]   ;;  %s2020_s4 = inlined_call_operand.hbm [shape: f32[2,8,1024], index: 4, kind: output, shape index: {}]  }
   0x1   :  { %2021 = sst [smem:[#allocation19_spill]] %s2019_s3  ;;  %s10_s17 = sshll.u32 %s2016_s0, 4  ;;  %s11_s17 = int_to_ptr.hbm [resolvable:$true] %s10_s17 }
   0x2   :  { %13 = dma.hbm_to_smem %s11_s17, 16, %s1411_s18, [#allocation2] }
   0x3   :  { %1369 = dma.done.wait [#allocation2], 16 }
   0x4   :  { %1370 = vsyncadd [#allocation2], 4294967280 }
   0x5   :  { %16 = sfence }
   0x6   :  { %17 = vsyncpa [#allocation5], 0 }
   0x7   :  { %19 = vsyncpa [#allocation5 + $0x1], 0 }
   0x8   :  { %20 = vsyncpa [#allocation8], 0 }
   0x9   :  { %22 = vsyncpa [#allocation8 + $0x1], 0 }
   0xa   :  { %23 = vsyncpa [#allocation6], 0 }
   0xb   :  { %25 = vsyncpa [#allocation6 + $0x1], 0  ;;  %s1449_s19 = smov 0   ;;  %s1451_s20 = smov 0  }
   0xc   :  { %s1453_s21 = smov 0   ;;  %s1455_s22 = smov 0  }
   0xd   :  { %s1457_s0 = smov 0   ;;  %s1459_s23 = smov 0  }
   0xe LB: > { %s1480_s24 = sadd.s32 4294967295, %s1409_s23   ;;  %s1045_s25 = sadd.s32 4294967294, %s1409_s23   ;;  %s1409_s23 = sphi %s1459_s23, %s31_s23   ;;  %s1405_s0 = sphi %s1457_s0, %s2048_s0   ;;  %s1401_s22 = sphi %s1455_s22, %s2047_s22   ;;  %s1397_s21 = sphi %s1453_s21, %s2046_s21   ;;  %s1393_s20 = sphi %s1451_s20, %s2045_s20   ;;  %s1389_s19 = sphi %s1449_s19, %s2044_s19  }
   0xf   : > { %s50_s26 = sadd.s32 1, %s1405_s0  ;;  %s59_s27 = sadd.s32 1, %s1397_s21 }
  0x10   : > { %p52_p0 = scmp.ge.s32.totalorder %s50_s26, 2  ;;  %p66_p1 = scmp.ne.s32.totalorder %s1397_s21, %s1393_s20 }
  0x11   : > { %p67_p2 = scmp.eq.s32.totalorder %s1409_s23, 0  ;;  %p72_p3 = scmp.ne.s32.totalorder %s1393_s20, %s1389_s19 }
  0x12   : > { %s2050_s26 = smov (%p52_p0, %s50_s26), 0  ;;  %p73_p5 = scmp.eq.s32.totalorder %s1480_s24, 0 }
  0x13   : > { %p1492_p4 = por %p67_p2, %p66_p1  ;;  %s54_s29 = ssub.s32 %s1405_s0, %s2050_s26 }
  0x14   : > { %p147_p6 = scmp.eq.s32.totalorder %s1480_s24, 1  ;;  %p57_p7 = scmp.eq.s32.totalorder %s54_s29, 0 }
  0x15   : > { %p1502_p8 = por %p73_p5, %p72_p3  ;;  %p153_p10 = scmp.eq.s32.totalorder %s1045_s25, 1 }
  0x16   : > { %p1506_p9 = por %p147_p6, %p66_p1  ;;  %p1046_p12 = scmp.ge.s32.totalorder %s1409_s23, 1 }
  0x17   : > { %s1511_s6 = scalar_select %p57_p7, %s1397_s21, %s59_s27  }
  0x18   : > { %p1513_p11 = por %p153_p10, %p72_p3  ;;  %p160_p13 = scmp.lt.s32.totalorder %s1409_s23, 3 }
  0x19   : > { %s2027_s3 = sld [smem:[#allocation19_spill]]  ;;  %s1412_s12 = smov [#allocation9]  }
  0x1a   : > { %p1519_p0 = pnand %p1046_p12, %p160_p13  ;;  %s174_s13 = sshll.u32 %s1412_s12, 4  ;;  %s175_s13 = int_to_ptr.vmem [resolvable:$true] %s174_s13 }
  0x1b   : > { %p1048_p3 = scmp.ge.s32.totalorder %s1409_s23, 2 }
  0x1c   : > { %p1098_p1 = pneg %p1519_p0  ;;  %s185_s14 = sand.u32 (!%p1048_p3), 1, %s1397_s21  }
  0x1d   : > { %181 = sbr.rel (%p1048_p3) target bundleno = 51 (0x33), region = 20  ;;  %s1078_s15 = sshll.u32 (!%p1048_p3), %s1405_s0, 5 }
  0x1e   : > { %p1099_p2 = pnand %p1098_p1, %p73_p5  ;;  %s1049_s16 = sshll.u32 (!%p1048_p3), %s185_s14, 5 }
  0x1f   : > { %s172_s11 = sshll.u32 %s2027_s3, 4  ;;  %s196_s25 = scalar_lea.hbm (!%p1048_p3), %s2017_s1, %s1078_s15  ;;  %s173_s11 = int_to_ptr.hbm [resolvable:$true] %s172_s11 }
  0x20   : > { %1101 = dma.hbm_to_vmem [thread:$0]  (!%p1099_p2), %s173_s11, 256, %s175_s13, [#allocation8]  }
  0x21   : > { %s197_s27 = sshll.u32 (!%p1048_p3), %s196_s25, 4  ;;  %s189_s29 = scalar_lea.vmem (!%p1048_p3), [#allocation4], %s1049_s16  ;;  %s198_s27 = int_to_ptr.hbm [resolvable:$true] %s197_s27 }
  0x22   : > { %s199_s9 = sshll.u32 %s189_s29, 4  ;;  %s186_s10 = scalar_lea.sflag [#allocation5], %s185_s14  ;;  %s200_s9 = int_to_ptr.vmem [resolvable:$true] %s199_s9 }
  0x23   : > { %s1413_s11 = smov 256   ;;  %s1414_s12 = smov 16  }
  0x24   : > { %1083 = dma.hbm_to_vmem [thread:$0]  (%p1492_p4), %s198_s27, 512, %s200_s9, %s186_s10, %s1413_s11, %s1413_s11, %s1414_s12  }
  0x25   : > { %s209_s13 = sand.u32 1, %s1409_s23   ;;  %s1052_s3 = sshll.u32 %s185_s14, 7 }
  0x26   : > { %s1079_s17 = sshll.u32 %s1405_s0, 6  ;;  %s213_s15 = scalar_lea.vmem [#allocation7], %s1052_s3 }
  0x27   : > { %s235_s16 = sshll.u32 %s213_s15, 4  ;;  %s220_s29 = scalar_lea.hbm %s2018_s2, %s1079_s17  ;;  %s236_s16 = int_to_ptr.vmem [resolvable:$true] %s235_s16 }
  0x28   : > { %s1084_s27 = scalar_select %p1492_p4, [#allocation0], [#allocation13] }
  0x29   : > { %s233_s9 = sshll.u32 %s220_s29, 4  ;;  %s1415_s11 = smov 2048   ;;  %s234_s9 = int_to_ptr.hbm [resolvable:$true] %s233_s9 }
  0x2a   : > { %s225_s10 = sld [smem:[%s1084_s27]]   ;;  %s1416_s14 = smov 1024  }
  0x2b   : > { %1085 = sst [smem:[#allocation12]] (%p1492_p4), %s1415_s11  ;;  %s1417_s3 = smov 2  }
  0x2c   : > { %1086 = sst [smem:[#allocation12 + $0x1]] (%p1492_p4), %s1416_s14  ;;  %s1418_s12 = smov 512  }
  0x2d   : > { %1087 = sst [smem:[#allocation12 + $0x2]] (%p1492_p4), %s1417_s3  ;;  %s1419_s15 = smov 32  }
  0x2e   : > { %1088 = sst [smem:[#allocation12 + $0x3]] (%p1492_p4), %s1418_s12  ;;  %s210_s25 = scalar_lea.sflag [#allocation8], %s209_s13 }
  0x2f   : > { %1089 = sst [smem:[#allocation12 + $0x4]] (%p1492_p4), %s1418_s12  ;;  %s1420_s29 = smov [#allocation11]  }
  0x30   : > { %s1055_s17 = sshll.u32 %s225_s10, 26  ;;  %1090 = sst [smem:[#allocation12 + $0x5]] (%p1492_p4), %s1419_s15 }
  0x31   : > { %s1056_s18 = sadd.s32 134217728, %s1055_s17 }
  0x32   : > { %1091 = dma.general (%p1492_p4), %s234_s9, 2048, %s236_s16, %s210_s25, %s1420_s29, [#allocation12], %s1056_s18, 0  }
  0x33 PF: > { %260 = sbr.rel (%p1519_p0) target bundleno = 238 (0xee), region = 32  ;;  %s1564_s27 = sand.u32 (!%p1519_p0), 1, %s1393_s20  }
  0x34   : > { %s1058_s11 = sshll.u32 (!%p1519_p0), %s1564_s27, 5  ;;  %s263_s10 = scalar_lea.sflag (!%p1519_p0), [#allocation5], %s1564_s27 }
  0x35   : > { %s1568_s14 = scalar_lea.vmem (!%p1519_p0), [#allocation4], %s1058_s11 }
  0x38   : > { %1372 = dma.done.wait (%p1502_p8), %s263_s10, 512  }
  0x39   : > { %1374 = vsyncadd (%p1502_p8), %s263_s10, 4294966784  ;;  %s272_s28 = sand.u32 1, %s1480_s24   ;;  %s1059_s8 = sshll.u32 %s1564_s27, 7 }
  0x3a   : > { %s273_s13 = scalar_lea.sflag [#allocation8], %s272_s28  ;;  %s1576_s16 = scalar_lea.vmem [#allocation7], %s1059_s8 }
  0x3b   : > { %1376 = dma.done.wait (%p1502_p8), %s273_s13, 2048  }
  0x3c   : > { %1378 = vsyncadd (%p1502_p8), %s273_s13, 4294965248 }
  0x3d   : > { %1380 = dma.done.wait (%p73_p5), [#allocation8], 256  }
  0x3e   : > { %1382 = vsyncadd (%p73_p5), [#allocation8], 4294967040  ;;  %v325_v0 = vld [vmem:[%s1576_s16] sm:$0xff]  ;;  %v474_v10 = vld [vmem:[%s1576_s16 + $0x8] sm:$0xff]  ;;  %s1594_s24 = sld [smem:[#allocation3]]  ;;  %s1061_s12 = sshll.u32 %s1564_s27, 6 }
  0x3f   : > { %v326_v1 = vld [vmem:[%s1576_s16 + $0x20] sm:$0xff]  ;;  %v327_v3 = vunpack.c.l.bf16 %v325_v0  ;;  %v328_v7 = vunpack.c.h.bf16 %v325_v0  ;;  %v475_v11 = vld [vmem:[%s1576_s16 + $0x28] sm:$0xff]  ;;  %v476_v15 = vunpack.c.l.bf16 %v474_v10  ;;  %s1596_s30 = sld [smem:[#allocation3 + $0x1]]  ;;  %v477_v28 = vunpack.c.h.bf16 %v474_v10  ;;  %v1601_v32 = vld [vmem:[%s1576_s16 + $0x10] sm:$0xff]  ;;  %s1866_s17 = scalar_lea.vmem [#allocation10], %s1061_s12 }
  0x40   : > { %v1065_v2 = vld [vmem:[%s1576_s16 + $0x40] sm:$0xff]  ;;  %v329_v4 = vunpack.c.l.bf16 %v326_v1  ;;  %v330_v9 = vunpack.c.h.bf16 %v326_v1  ;;  %v1067_v16 = vld [vmem:[%s1576_s16 + $0x48] sm:$0xff]  ;;  %v478_v20 = vunpack.c.l.bf16 %v475_v11  ;;  %s1598_s9 = sld [smem:[#allocation3 + $0x2]]  ;;  %v479_v31 = vunpack.c.h.bf16 %v475_v11  ;;  %v1604_v33 = vld [vmem:[%s1576_s16 + $0x30] sm:$0xff]  ;;  %s1080_s15 = sshll.u32 %s1401_s22, 6 }
  0x41   : > { %v1066_v5 = vld [vmem:[%s1576_s16 + $0x60] sm:$0xff]  ;;  %v386_v6 = vunpack.c.l.bf16 %v1065_v2  ;;  %v387_v13 = vunpack.c.h.bf16 %v1065_v2  ;;  %v1068_v17 = vld [vmem:[%s1576_s16 + $0x68] sm:$0xff]  ;;  %v530_v23 = vunpack.c.l.bf16 %v1067_v16  ;;  %s1606_s3 = sld [smem:[#allocation3 + $0x3]]  ;;  %v531_v35 = vunpack.c.h.bf16 %v1067_v16  ;;  %v1610_v37 = vld [vmem:[%s1568_s14 + $0x10] sm:$0xff]  ;;  %s920_s29 = scalar_lea.hbm %s2020_s4, %s1080_s15 }
  0x42   : > { %v388_v8 = vunpack.c.l.bf16 %v1066_v5  ;;  %v331_v12 = vsub.f32 %v327_v3, %v329_v4  ;;  %v389_v14 = vunpack.c.h.bf16 %v1066_v5  ;;  %v332_v19 = vsub.f32 %v328_v7, %v330_v9  ;;  %v317_v36 = vld [vmem:[%s1568_s14] sm:$0xff]  ;;  %v318_v43 = vld [vmem:[%s1568_s14 + $0x8] sm:$0xff]  ;;  %v1616_v44 = vld [vmem:[%s1568_s14 + $0x18] sm:$0xff]  ;;  %s922_s22 = sshll.u32 %s1866_s17, 4  ;;  %s924_s11 = sshll.u32 %s920_s29, 4  ;;  %s923_s22 = int_to_ptr.vmem [resolvable:$true] %s922_s22  ;;  %s925_s11 = int_to_ptr.hbm [resolvable:$true] %s924_s11 }
  0x43   : > { %v532_v24 = vunpack.c.l.bf16 %v1068_v17  ;;  %v480_v27 = vsub.f32 %v476_v15, %v478_v20  ;;  %v481_v39 = vsub.f32 %v477_v28, %v479_v31  ;;  %v533_v40 = vunpack.c.h.bf16 %v1068_v17  ;;  %v1622_v49 = vld [vmem:[%s1576_s16 + $0x50] sm:$0xff]  ;;  %v1646_v15 = vld [vmem:[#allocation9] sm:$0xff]  ;;  %s907_s10 = scalar_lea.sflag [#allocation6], %s1564_s27  ;;  %s1331_s14 = sshra.s32 %s925_s11, 4  ;;  %s1332_s14 = int_to_ptr.hbm [resolvable:$true] %s1331_s14 }
  0x44   : > { %v390_v18 = vsub.f32 %v386_v6, %v388_v8  ;;  %v333_v21 = vmul.f32 0.5, %v331_v12  ;;  %v391_v22 = vsub.f32 %v387_v13, %v389_v14  ;;  %v334_v26 = vmul.f32 0.5, %v332_v19  ;;  %v1625_v50 = vld [vmem:[%s1576_s16 + $0x70] sm:$0xff]  ;;  %s1333_s28 = scalar_lea.hbm %s1332_s14, 64  ;;  %p1338_p7 = scmp.lt.s32.totalorder %s1332_s14, %s2020_s4 }
  0x45   : > { %v534_v30 = vsub.f32 %v530_v23, %v532_v24  ;;  %v482_v34 = vmul.f32 0.5, %v480_v27  ;;  %v620_v41 = vunpack.c.l.bf16 %v1601_v32  ;;  %v622_v42 = vunpack.c.l.bf16 %v1604_v33  ;;  %p1334_p4 = scmp.ne.s32.totalorder %s1332_s14, %s1333_s28 }
  0x46   : > { %v392_v25 = vmul.f32 0.5, %v390_v18  ;;  %1167 = vtanh.f32 %v333_v21  ;;  %v393_v29 = vmul.f32 0.5, %v391_v22  ;;  %v483_v45 = vmul.f32 0.5, %v481_v39 }
  0x47   : > { %v536_v38 = vmul.f32 0.5, %v534_v30  ;;  %v535_v46 = vsub.f32 %v531_v35, %v533_v40  ;;  %v1619_v47 = vsub.f32 %v317_v36, %v1610_v37  ;;  %v624_v48 = vsub.f32 %v620_v41, %v622_v42  ;;  %p1335_p5 = pnand %p1334_p4, %p1506_p9 }
  0x48   : > { %1169 = vtanh.f32 %v392_v25  ;;  %v674_v53 = vunpack.c.l.bf16 %v1622_v49  ;;  %v676_v54 = vunpack.c.l.bf16 %v1625_v50  ;;  %v1630_v57 = vstv %s1594_s24 }
  0x49   : > { %1171 = vtanh.f32 %v334_v26  ;;  %v537_v52 = vmul.f32 0.5, %v535_v46  ;;  %v1633_v58 = vsub.f32 %v318_v43, %v1616_v44  ;;  %v626_v59 = vmul.f32 0.5, %v624_v48  ;;  %v1657_v26 = vld [vmem:[#allocation9 + $0x8] sm:$0xff]  ;;  %p1336_p6 = pneg %p1335_p5 }
  0x4a   : > { %1173 = vtanh.f32 %v393_v29  ;;  %v1636_v61 = vstv %s1596_s30  ;;  %v678_v63 = vsub.f32 %v674_v53, %v676_v54  ;;  %v1639_v2 = vstv %s1598_s9 }
  0x4b   : > { %1175 = vtanh.f32 %v482_v34  ;;  %v1642_v3 = vstv %s1606_s3  ;;  %v621_v13 = vunpack.c.h.bf16 %v1601_v32  ;;  %v623_v19 = vunpack.c.h.bf16 %v1604_v33  ;;  %v1745_v32 = vld [vmem:[%s1576_s16 + $0x18] sm:$0xff] }
  0x4c   : > { %1177 = vtanh.f32 %v536_v38  ;;  %v1168_v51 = vpop.eup %1167  ;;  %v680_v8 = vmul.f32 0.5, %v678_v63 }
  0x4d   : > { %1179 = vtanh.f32 %v483_v45  ;;  %v337_v56 = vmul.f32 0.5, %v1168_v51 }
  0x4e   : > { %v1170_v55 = vpop.eup %1169  ;;  %1181 = vtanh.f32 %v537_v52 }
  0x4f   : > { %v1172_v60 = vpop.eup %1171  ;;  %v396_v62 = vmul.f32 0.5, %v1170_v55  ;;  %v339_v1 = vadd.f32 0.5, %v337_v56  ;;  %1183 = vtanh.f32 %v626_v59 }
  0x50   : > { %v1174_v0 = vpop.eup %1173  ;;  %v338_v4 = vmul.f32 0.5, %v1172_v60  ;;  %1185 = vtanh.f32 %v680_v8 }
  0x51   : > { %v1176_v5 = vpop.eup %1175  ;;  %v398_v6 = vadd.f32 0.5, %v396_v62  ;;  %v397_v7 = vmul.f32 0.5, %v1174_v0  ;;  %v341_v10 = vmul.f32 %v339_v1, %v1619_v47 }
  0x52   : > { %v1178_v9 = vpop.eup %1177  ;;  %v340_v11 = vadd.f32 0.5, %v338_v4  ;;  %v486_v12 = vmul.f32 0.5, %v1176_v5 }
  0x53   : > { %v1180_v14 = vpop.eup %1179  ;;  %v400_v16 = vmul.f32 %v398_v6, %v1619_v47  ;;  %v399_v17 = vadd.f32 0.5, %v397_v7  ;;  %v540_v18 = vmul.f32 0.5, %v1178_v9  ;;  %v1651_v20 = vadd.f32 %v341_v10, %v1610_v37 }
  0x54   : > { %v342_v21 = vmul.f32 %v340_v11, %v1633_v58  ;;  %v488_v22 = vadd.f32 0.5, %v486_v12  ;;  %v487_v23 = vmul.f32 0.5, %v1180_v14  ;;  %v1182_v24 = vpop.eup %1181 }
  0x55   : > { %v1655_v25 = vadd.f32 %v400_v16, %v1610_v37  ;;  %v401_v27 = vmul.f32 %v399_v17, %v1633_v58  ;;  %v542_v28 = vadd.f32 0.5, %v540_v18  ;;  %v345_v29 = vmul.f32 %v1651_v20, %v1646_v15  ;;  %v1666_v35 = vpop.eup %1183 }
  0x56   : > { %v1663_v30 = vadd.f32 %v342_v21, %v1616_v44  ;;  %v490_v31 = vmul.f32 %v488_v22, %v1619_v47  ;;  %v489_v34 = vadd.f32 0.5, %v487_v23  ;;  %v541_v40 = vmul.f32 0.5, %v1182_v24  ;;  %v1690_v59 = vpop.eup %1185 }
  0x57   : > { %v404_v36 = vmul.f32 %v1655_v25, %v1646_v15  ;;  %v1671_v38 = vadd.f32 %v401_v27, %v1616_v44  ;;  %v544_v39 = vmul.f32 %v542_v28, %v1619_v47  ;;  %v347_v41 = vrot.slane %v345_v29, 4 }
  0x58   : > { %v346_v42 = vmul.f32 %v1663_v30, %v1657_v26  ;;  %v1677_v43 = vadd.f32 %v490_v31, %v1610_v37  ;;  %v491_v45 = vmul.f32 %v489_v34, %v1633_v58  ;;  %v543_v52 = vadd.f32 0.5, %v541_v40 }
  0x59   : > { %v406_v46 = vrot.slane %v404_v36, 4  ;;  %v405_v48 = vmul.f32 %v1671_v38, %v1657_v26  ;;  %v1683_v51 = vadd.f32 %v544_v39, %v1610_v37  ;;  %v348_v53 = vadd.f32 %v347_v41, %v345_v29 }
  0x5a   : > { %v353_v54 = vrot.slane %v346_v42, 4  ;;  %v494_v55 = vmul.f32 %v1677_v43, %v1646_v15  ;;  %v1688_v56 = vadd.f32 %v491_v45, %v1616_v44  ;;  %v545_v0 = vmul.f32 %v543_v52, %v1633_v58 }
  0x5b   : > { %v407_v60 = vadd.f32 %v406_v46, %v404_v36  ;;  %v412_v62 = vrot.slane %v405_v48, 4  ;;  %v548_v63 = vmul.f32 %v1683_v51, %v1646_v15  ;;  %v349_v1 = vrot.slane %v348_v53, 2 }
  0x5c   : > { %v354_v4 = vadd.f32 %v353_v54, %v346_v42  ;;  %v496_v5 = vrot.slane %v494_v55, 4  ;;  %v495_v6 = vmul.f32 %v1688_v56, %v1657_v26  ;;  %v1698_v10 = vadd.f32 %v545_v0, %v1616_v44 }
  0x5d   : > { %v408_v7 = vrot.slane %v407_v60, 2  ;;  %v413_v8 = vadd.f32 %v412_v62, %v405_v48  ;;  %v550_v9 = vrot.slane %v548_v63, 4  ;;  %v350_v11 = vadd.f32 %v349_v1, %v348_v53 }
  0x5e   : > { %v355_v12 = vrot.slane %v354_v4, 2  ;;  %v497_v14 = vadd.f32 %v496_v5, %v494_v55  ;;  %v502_v16 = vrot.slane %v495_v6, 4  ;;  %v549_v22 = vmul.f32 %v1698_v10, %v1657_v26 }
  0x5f   : > { %v409_v17 = vadd.f32 %v408_v7, %v407_v60  ;;  %v414_v18 = vrot.slane %v413_v8, 2  ;;  %v551_v21 = vadd.f32 %v550_v9, %v548_v63  ;;  %v351_v23 = vrot.slane %v350_v11, 1 }
  0x60   : > { %v356_v24 = vadd.f32 %v355_v12, %v354_v4  ;;  %v498_v27 = vrot.slane %v497_v14, 2  ;;  %v503_v28 = vadd.f32 %v502_v16, %v495_v6  ;;  %v556_v36 = vrot.slane %v549_v22, 4 }
  0x61   : > { %v410_v29 = vrot.slane %v409_v17, 1  ;;  %v415_v31 = vadd.f32 %v414_v18, %v413_v8  ;;  %v552_v34 = vrot.slane %v551_v21, 2  ;;  %v352_v39 = vadd.f32 %v351_v23, %v350_v11 }
  0x62   : > { %v357_v40 = vrot.slane %v356_v24, 1  ;;  %v499_v41 = vadd.f32 %v498_v27, %v497_v14  ;;  %v504_v42 = vrot.slane %v503_v28, 2  ;;  %v557_v52 = vadd.f32 %v556_v36, %v549_v22 }
  0x63   : > { %v411_v45 = vadd.f32 %v410_v29, %v409_v17  ;;  %v416_v46 = vrot.slane %v415_v31, 1  ;;  %v553_v48 = vadd.f32 %v552_v34, %v551_v21  ;;  %v360_v53 = vmul.f32 %v1630_v57, %v352_v39 }
  0x64   : > { %v358_v54 = vadd.f32 %v357_v40, %v356_v24  ;;  %v500_v55 = vrot.slane %v499_v41, 1  ;;  %v505_v60 = vadd.f32 %v504_v42, %v503_v28  ;;  %v558_v1 = vrot.slane %v557_v52, 2 }
  0x65   : > { %v418_v62 = vmul.f32 %v411_v45, %v1630_v57  ;;  %v417_v63 = vadd.f32 %v416_v46, %v415_v31  ;;  %v554_v0 = vrot.slane %v553_v48, 1  ;;  %v363_v4 = vadd.f32 %v1636_v61, %v360_v53 }
  0x66   : > { %v361_v5 = vmul.f32 %v1630_v57, %v358_v54  ;;  %v501_v6 = vadd.f32 %v500_v55, %v499_v41  ;;  %v506_v7 = vrot.slane %v505_v60, 1  ;;  %v559_v12 = vadd.f32 %v558_v1, %v557_v52 }
  0x67   : > { %v420_v8 = vadd.f32 %v418_v62, %v1636_v61  ;;  %v419_v9 = vmul.f32 %v417_v63, %v1630_v57  ;;  %v555_v11 = vadd.f32 %v554_v0, %v553_v48  ;;  %v365_v14 = vmax.f32 %v363_v4, 0.0 }
  0x68   : > { %v364_v16 = vadd.f32 %v1636_v61, %v361_v5  ;;  %v508_v17 = vmul.f32 %v501_v6, %v1630_v57  ;;  %v507_v18 = vadd.f32 %v506_v7, %v505_v60  ;;  %v560_v24 = vrot.slane %v559_v12, 1 }
  0x69   : > { %v422_v21 = vmax.f32 %v420_v8, 0.0  ;;  %v421_v22 = vadd.f32 %v419_v9, %v1636_v61  ;;  %v562_v23 = vmul.f32 %v555_v11, %v1630_v57  ;;  %v368_v27 = vmul.f32 %v1639_v2, %v365_v14 }
  0x6a   : > { %v366_v28 = vmax.f32 %v364_v16, 0.0  ;;  %v510_v29 = vadd.f32 %v508_v17, %v1636_v61  ;;  %v509_v31 = vmul.f32 %v507_v18, %v1630_v57  ;;  %v561_v40 = vadd.f32 %v560_v24, %v559_v12 }
  0x6b   : > { %v424_v34 = vmul.f32 %v422_v21, %v1639_v2  ;;  %v423_v36 = vmax.f32 %v421_v22, 0.0  ;;  %v564_v39 = vadd.f32 %v562_v23, %v1636_v61  ;;  %v371_v41 = vadd.f32 %v1642_v3, %v368_v27 }
  0x6c   : > { %v369_v42 = vmul.f32 %v1639_v2, %v366_v28  ;;  %v512_v45 = vmax.f32 %v510_v29, 0.0  ;;  %v511_v46 = vadd.f32 %v509_v31, %v1636_v61  ;;  %v563_v54 = vmul.f32 %v561_v40, %v1630_v57 }
  0x6d   : > { %v426_v48 = vadd.f32 %v424_v34, %v1642_v3  ;;  %v425_v52 = vmul.f32 %v423_v36, %v1639_v2  ;;  %v566_v53 = vmax.f32 %v564_v39, 0.0  ;;  %v373_v55 = vmul.f32 0.5, %v371_v41 }
  0x6e   : > { %v372_v60 = vadd.f32 %v1642_v3, %v369_v42  ;;  %v514_v62 = vmul.f32 %v512_v45, %v1639_v2  ;;  %v513_v63 = vmax.f32 %v511_v46, 0.0  ;;  %v565_v5 = vadd.f32 %v563_v54, %v1636_v61 }
  0x6f   : > { %v428_v0 = vmul.f32 0.5, %v426_v48  ;;  %v427_v1 = vadd.f32 %v425_v52, %v1642_v3  ;;  %v568_v4 = vmul.f32 %v566_v53, %v1639_v2  ;;  %1187 = vtanh.f32 %v373_v55  ;;  %v1754_v55 = vld [vmem:[%s1576_s16 + $0x38] sm:$0xff] }
  0x70   : > { %v374_v6 = vmul.f32 0.5, %v372_v60  ;;  %v516_v7 = vadd.f32 %v514_v62, %v1642_v3  ;;  %v515_v8 = vmul.f32 %v513_v63, %v1639_v2  ;;  %v567_v12 = vmax.f32 %v565_v5, 0.0 }
  0x71   : > { %1189 = vtanh.f32 %v428_v0  ;;  %v429_v9 = vmul.f32 0.5, %v427_v1  ;;  %v570_v11 = vadd.f32 %v568_v4, %v1642_v3  ;;  %v630_v17 = vmul.f32 0.5, %v1666_v35 }
  0x72   : > { %1191 = vtanh.f32 %v374_v6  ;;  %v518_v14 = vmul.f32 0.5, %v516_v7  ;;  %v517_v16 = vadd.f32 %v515_v8, %v1642_v3  ;;  %v569_v21 = vmul.f32 %v567_v12, %v1639_v2 }
  0x73   : > { %1193 = vtanh.f32 %v429_v9  ;;  %v572_v18 = vmul.f32 0.5, %v570_v11  ;;  %v684_v22 = vmul.f32 0.5, %v1690_v59  ;;  %v632_v24 = vadd.f32 0.5, %v630_v17 }
  0x74   : > { %1195 = vtanh.f32 %v518_v14  ;;  %v519_v23 = vmul.f32 0.5, %v517_v16  ;;  %v625_v27 = vsub.f32 %v621_v13, %v623_v19  ;;  %v571_v28 = vadd.f32 %v569_v21, %v1642_v3 }
  0x75   : > { %1197 = vtanh.f32 %v572_v18  ;;  %v686_v29 = vadd.f32 0.5, %v684_v22  ;;  %v675_v35 = vunpack.c.h.bf16 %v1622_v49  ;;  %v1188_v31 = vpop.eup %1187  ;;  %v634_v34 = vmul.f32 %v632_v24, %v1619_v47 }
  0x76   : > { %1199 = vtanh.f32 %v519_v23  ;;  %v677_v59 = vunpack.c.h.bf16 %v1625_v50  ;;  %v377_v39 = vmul.f32 0.5, %v1188_v31  ;;  %v573_v40 = vmul.f32 0.5, %v571_v28 }
  0x77   : > { %v1190_v36 = vpop.eup %1189  ;;  %v688_v33 = vmul.f32 %v686_v29, %v1619_v47  ;;  %v1748_v41 = vadd.f32 %v634_v34, %v1610_v37  ;;  %v627_v49 = vmul.f32 0.5, %v625_v27  ;;  %v764_v60 = vunpack.c.l.bf16 %v1745_v32 }
  0x78   : > { %v1192_v13 = vpop.eup %1191  ;;  %v432_v19 = vmul.f32 0.5, %v1190_v36  ;;  %v379_v45 = vadd.f32 0.5, %v377_v39  ;;  %1201 = vtanh.f32 %v573_v40  ;;  %v679_v48 = vsub.f32 %v675_v35, %v677_v59 }
  0x79   : > { %v1194_v42 = vpop.eup %1193  ;;  %v378_v46 = vmul.f32 0.5, %v1192_v13  ;;  %v1751_v54 = vadd.f32 %v688_v33, %v1610_v37  ;;  %v638_v4 = vmul.f32 %v1748_v41, %v1646_v15  ;;  %1203 = vtanh.f32 %v627_v49 }
  0x7a   : > { %v1196_v50 = vpop.eup %1195  ;;  %v434_v52 = vadd.f32 0.5, %v432_v19  ;;  %v433_v53 = vmul.f32 0.5, %v1194_v42  ;;  %v381_v63 = vmul.f32 %v379_v45, %v1651_v20  ;;  %v1763_v12 = vmul.f32 0.5, %v679_v48 }
  0x7b   : > { %v1198_v62 = vpop.eup %1197  ;;  %v380_v0 = vadd.f32 0.5, %v378_v46  ;;  %v522_v1 = vmul.f32 0.5, %v1196_v50  ;;  %v766_v14 = vunpack.c.l.bf16 %v1754_v55  ;;  %v692_v17 = vmul.f32 %v1751_v54, %v1646_v15  ;;  %v1072_v50 = vld [vmem:[%s1576_s16 + $0x78] sm:$0xff] }
  0x7c   : > { %v1200_v5 = vpop.eup %1199  ;;  %v436_v6 = vmul.f32 %v434_v52, %v1655_v25  ;;  %v1761_v7 = vadd.f32 %v434_v52, %v379_v45  ;;  %v435_v8 = vadd.f32 0.5, %v433_v53  ;;  %v576_v9 = vmul.f32 0.5, %v1198_v62 }
  0x7d   : > { %v523_v11 = vmul.f32 0.5, %v1200_v5  ;;  %v382_v20 = vmul.f32 %v380_v0, %v1663_v30  ;;  %v524_v16 = vadd.f32 0.5, %v522_v1  ;;  %v640_v23 = vrot.slane %v638_v4, 4 }
  0x7e   : > { %1205 = vrcp.f32 %v1761_v7  ;;  %v1202_v18 = vpop.eup %1201  ;;  %v451_v25 = vand.u32 2147483647, %v1761_v7  ;;  %v453_v21 = vand.u32 2147483648, %v1761_v7  ;;  %v1772_v22 = vadd.f32 %v435_v8, %v380_v0 }
  0x7f   : > { %v1774_v24 = vadd.f32 %v436_v6, %v381_v63  ;;  %v437_v27 = vmul.f32 %v435_v8, %v1671_v38  ;;  %v578_v28 = vadd.f32 0.5, %v576_v9  ;;  %v577_v29 = vmul.f32 0.5, %v1202_v18  ;;  %v1204_v39 = vpop.eup %1203 }
  0x80   : > { %vm447_vm0 = vweird.f32 %v1761_v7  ;;  %1207 = vrcp.f32 %v1772_v22  ;;  %v526_v30 = vmul.f32 %v524_v16, %v1677_v43  ;;  %v525_v35 = vadd.f32 0.5, %v523_v11 }
  0x81   : > { %v465_v31 = vand.u32 2147483647, %v1772_v22  ;;  %v467_v34 = vand.u32 2147483648, %v1772_v22  ;;  %v580_v59 = vmul.f32 %v578_v28, %v1683_v51  ;;  %v1783_v36 = vadd.f32 %v578_v28, %v524_v16 }
  0x82   : > { %vm1785_vm1 = vcmp.eq.f32.partialorder %v451_v25, 8.507059e+37  ;;  %v454_v40 = vor.u32 1.1754944e-38, %v453_v21  ;;  %v579_v33 = vadd.f32 0.5, %v577_v29  ;;  %v641_v13 = vadd.f32 %v640_v23, %v638_v4 }
  0x83   : > { %v694_v19 = vrot.slane %v692_v17, 4  ;;  %v1789_v43 = vadd.f32 %v437_v27, %v382_v20  ;;  %vm461_vm2 = vweird.f32 %v1772_v22  ;;  %1209 = vrcp.f32 %v1783_v36 }
  0x84   : > { %v1206_v49 = vpop.eup %1205  ;;  %v527_v51 = vmul.f32 %v525_v35, %v1688_v56  ;;  %v468_v45 = vor.u32 1.1754944e-38, %v467_v34  ;;  %v1795_v46 = vadd.f32 %v580_v59, %v526_v30  ;;  %v595_v48 = vand.u32 2147483647, %v1783_v36 }
  0x85   : > { %v443_v42 = vmul.f32 %v1206_v49, %v1761_v7  ;;  %vm1798_vm3 = vcmp.eq.f32.partialorder %v465_v31, 8.507059e+37  ;;  %v597_v52 = vand.u32 2147483648, %v1783_v36  ;;  %v581_v53 = vmul.f32 %v579_v33, %v1698_v10 }
  0x86   : > { %v1804_v62 = vadd.f32 %v579_v33, %v525_v35  ;;  %v642_v63 = vrot.slane %v641_v13, 2  ;;  %v1208_v0 = vpop.eup %1207  ;;  %vm448_vm4 = vweird.f32 %v1206_v49  ;;  %vm591_vm5 = vweird.f32 %v1783_v36 }
  0x87   : > { %v444_v56 = vsub.f32 1.0, %v443_v42  ;;  %v695_v1 = vadd.f32 %v694_v19, %v692_v17  ;;  %v457_v4 = vmul.f32 %v1208_v0, %v1772_v22  ;;  %vm462_vm6 = vweird.f32 %v1208_v0  ;;  %vm1818_vm8 = vmor %vm447_vm0, %vm448_vm4 }
  0x88   : > { %v598_v5 = vor.u32 1.1754944e-38, %v597_v52  ;;  %v631_v6 = vmul.f32 0.5, %v1204_v39  ;;  %vm1808_vm7 = vcmp.eq.f32.partialorder %v595_v48, 8.507059e+37  ;;  %v1812_v10 = vadd.f32 %v581_v53, %v527_v51  ;;  %vm1833_vm11 = vmor %vm461_vm2, %vm462_vm6  ;;  %v1862_v53 = vld [vmem:[%s1576_s16 + $0x58] sm:$0xff]  ;;  %s1337_s16 = scalar_lea.hbm %s2020_s4, 128 }
  0x89   : > { %v445_v8 = vmul.f32 %v1206_v49, %v444_v56  ;;  %1211 = vrcp.f32 %v1804_v62  ;;  %v609_v11 = vand.u32 2147483647, %v1804_v62  ;;  %v1210_v20 = vpop.eup %1209  ;;  %v458_v17 = vsub.f32 1.0, %v457_v4  ;;  %p1339_p8 = scmp.lt.s32.totalorder %s1337_s16, %s1333_s28 }
  0x8a   : > { %v611_v18 = vand.u32 2147483648, %v1804_v62  ;;  %v643_v25 = vadd.f32 %v642_v63, %v641_v13  ;;  %v696_v21 = vrot.slane %v695_v1, 2  ;;  %v587_v27 = vmul.f32 %v1210_v20, %v1783_v36 }
  0x8b   : > { %v446_v23 = vadd.f32 %v1206_v49, %v445_v8  ;;  %vm592_vm9 = vweird.f32 %v1210_v20  ;;  %vm605_vm10 = vweird.f32 %v1804_v62  ;;  %v459_v28 = vmul.f32 %v1208_v0, %v458_v17  ;;  %p1340_p10 = por %p1339_p8, %p1338_p7 }
  0x8c   : > { %v1826_v29 = vor.u32 1.1754944e-38, %v611_v18  ;;  %v644_v7 = vrot.slane %v643_v25, 1  ;;  %v697_v30 = vadd.f32 %v696_v21, %v695_v1  ;;  %v588_v34 = vsub.f32 1.0, %v587_v27  ;;  %vm1855_vm13 = vmor %vm591_vm5, %vm592_vm9 }
  0x8d   : > { %v450_v35 = vsel %vm1818_vm8, %v1206_v49, %v446_v23  ;;  %v633_v59 = vadd.f32 0.5, %v631_v6  ;;  %1213 = vtanh.f32 %v1763_v12  ;;  %v460_v33 = vadd.f32 %v1208_v0, %v459_v28  ;;  %p1341_p12 = pnand %p1340_p10, %p1336_p6 }
  0x8e   : > { %v455_v39 = vsel %vm1785_vm1, %v454_v40, %v450_v35  ;;  %vm1840_vm12 = vcmp.eq.f32.partialorder %v609_v11, 8.507059e+37  ;;  %v645_v19 = vadd.f32 %v644_v7, %v643_v25  ;;  %v698_v22 = vrot.slane %v697_v30, 1 }
  0x8f   : > { %v1212_v49 = vpop.eup %1211  ;;  %v470_v51 = vmul.f32 %v455_v39, %v1774_v24  ;;  %v589_v42 = vmul.f32 %v1210_v20, %v588_v34  ;;  %v635_v48 = vmul.f32 %v633_v59, %v1633_v58  ;;  %v768_v12 = vsub.f32 %v764_v60, %v766_v14 }
  0x90   : > { %v464_v38 = vsel %vm1833_vm11, %v1208_v0, %v460_v33  ;;  %v601_v24 = vmul.f32 %v1212_v49, %v1804_v62  ;;  %vm606_vm14 = vweird.f32 %v1212_v49  ;;  %v652_v52 = vmul.f32 %v645_v19, %v1630_v57 }
  0x91   : > { %472 = vst [vmem:[%s1866_s17] sm:$0xff] %v470_v51  ;;  %v469_v60 = vsel %vm1798_vm3, %v468_v45, %v464_v38  ;;  %v590_v14 = vadd.f32 %v1210_v20, %v589_v42  ;;  %v699_v36 = vadd.f32 %v698_v22, %v697_v30  ;;  %v1872_v63 = vadd.f32 %v635_v48, %v1616_v44  ;;  %vm1890_vm15 = vmor %vm605_vm10, %vm606_vm14 }
  0x92   : > { %v471_v0 = vmul.f32 %v469_v60, %v1789_v43  ;;  %v602_v56 = vsub.f32 1.0, %v601_v24  ;;  %v654_v1 = vadd.f32 %v652_v52, %v1636_v61  ;;  %v770_v4 = vmul.f32 0.5, %v768_v12 }
  0x93   : > { %v1214_v6 = vpop.eup %1213  ;;  %v594_v8 = vsel %vm1855_vm13, %v1210_v20, %v590_v14  ;;  %v706_v11 = vmul.f32 %v699_v36, %v1630_v57  ;;  %v639_v45 = vmul.f32 %v1872_v63, %v1657_v26  ;;  %v818_v16 = vunpack.c.l.bf16 %v1862_v53 }
  0x94   : > { %473 = vst [vmem:[%s1866_s17 + $0x8] sm:$0xff] %v471_v0  ;;  %v599_v43 = vsel %vm1808_vm7, %v598_v5, %v594_v8  ;;  %v603_v17 = vmul.f32 %v1212_v49, %v602_v56  ;;  %v656_v18 = vmax.f32 %v654_v1, 0.0  ;;  %v685_v25 = vmul.f32 0.5, %v1214_v6 }
  0x95   : > { %v614_v21 = vmul.f32 %v599_v43, %v1795_v46  ;;  %v708_v23 = vadd.f32 %v706_v11, %v1636_v61  ;;  %v646_v27 = vrot.slane %v639_v45, 4  ;;  %1215 = vtanh.f32 %v770_v4 }
  0x96   : > { %v604_v28 = vadd.f32 %v1212_v49, %v603_v17  ;;  %v658_v9 = vmul.f32 %v656_v18, %v1639_v2  ;;  %v687_v5 = vadd.f32 0.5, %v685_v25  ;;  %v820_v7 = vunpack.c.l.bf16 %v1072_v50 }
  0x97   : > { %616 = vst [vmem:[%s1866_s17 + $0x10] sm:$0xff] %v614_v21  ;;  %v710_v30 = vmax.f32 %v708_v23, 0.0  ;;  %v647_v35 = vadd.f32 %v646_v27, %v639_v45  ;;  %v765_v46 = vunpack.c.h.bf16 %v1745_v32  ;;  %v767_v62 = vunpack.c.h.bf16 %v1754_v55 }
  0x98   : > { %v608_v31 = vsel %vm1890_vm15, %v1212_v49, %v604_v28  ;;  %v660_v34 = vadd.f32 %v658_v9, %v1642_v3  ;;  %v689_v59 = vmul.f32 %v687_v5, %v1633_v58  ;;  %v822_v39 = vsub.f32 %v818_v16, %v820_v7 }
  0x99   : > { %v613_v33 = vsel %vm1840_vm12, %v1826_v29, %v608_v31  ;;  %v712_v19 = vmul.f32 %v710_v30, %v1639_v2  ;;  %v648_v22 = vrot.slane %v647_v35, 2  ;;  %v769_v51 = vsub.f32 %v765_v46, %v767_v62 }
  0x9a   : > { %v615_v32 = vmul.f32 %v613_v33, %v1812_v10  ;;  %v662_v55 = vmul.f32 0.5, %v660_v34  ;;  %v1909_v42 = vadd.f32 %v689_v59, %v1616_v44  ;;  %v824_v49 = vmul.f32 0.5, %v822_v39 }
  0x9b   : > { %v1216_v48 = vpop.eup %1215  ;;  %v714_v12 = vadd.f32 %v712_v19, %v1642_v3  ;;  %v649_v38 = vadd.f32 %v648_v22, %v647_v35  ;;  %v771_v40 = vmul.f32 0.5, %v769_v51  ;;  %v819_v24 = vunpack.c.h.bf16 %v1862_v53 }
  0x9c   : > { %617 = vst [vmem:[%s1866_s17 + $0x18] sm:$0xff] %v615_v32  ;;  %1217 = vtanh.f32 %v662_v55  ;;  %v693_v29 = vmul.f32 %v1909_v42, %v1657_v26  ;;  %v774_v13 = vmul.f32 0.5, %v1216_v48  ;;  %v821_v52 = vunpack.c.h.bf16 %v1072_v50 }
  0x9d   : > { %v716_v10 = vmul.f32 0.5, %v714_v12  ;;  %v650_v60 = vrot.slane %v649_v38, 1  ;;  %1219 = vtanh.f32 %v824_v49 }
  0x9e   : > { %v700_v14 = vrot.slane %v693_v29, 4  ;;  %v776_v36 = vadd.f32 0.5, %v774_v13  ;;  %1221 = vtanh.f32 %v771_v40  ;;  %v823_v0 = vsub.f32 %v819_v24, %v821_v52 }
  0x9f   : > { %1223 = vtanh.f32 %v716_v10  ;;  %v651_v56 = vadd.f32 %v650_v60, %v649_v38 }
  0xa0   : > { %v701_v1 = vadd.f32 %v700_v14, %v693_v29  ;;  %v778_v4 = vmul.f32 %v776_v36, %v1619_v47  ;;  %v825_v53 = vmul.f32 0.5, %v823_v0 }
  0xa1   : > { %v653_v6 = vmul.f32 %v651_v56, %v1630_v57 }
  0xa2   : > { %v1218_v8 = vpop.eup %1217  ;;  %v702_v11 = vrot.slane %v701_v1, 2  ;;  %v1919_v45 = vadd.f32 %v778_v4, %v1610_v37  ;;  %1225 = vtanh.f32 %v825_v53 }
  0xa3   : > { %v1220_v50 = vpop.eup %1219  ;;  %v666_v16 = vmul.f32 0.5, %v1218_v8  ;;  %v655_v43 = vadd.f32 %v653_v6, %v1636_v61 }
  0xa4   : > { %v1222_v17 = vpop.eup %1221  ;;  %v703_v18 = vadd.f32 %v702_v11, %v701_v1  ;;  %v782_v25 = vmul.f32 %v1919_v45, %v1646_v15  ;;  %v828_v21 = vmul.f32 0.5, %v1220_v50 }
  0xa5   : > { %v1224_v20 = vpop.eup %1223  ;;  %v668_v23 = vadd.f32 0.5, %v666_v16  ;;  %v657_v27 = vmax.f32 %v655_v43, 0.0  ;;  %v775_v28 = vmul.f32 0.5, %v1222_v17 }
  0xa6   : > { %v720_v9 = vmul.f32 0.5, %v1224_v20  ;;  %v704_v5 = vrot.slane %v703_v18, 1  ;;  %v784_v7 = vrot.slane %v782_v25, 4  ;;  %v830_v30 = vadd.f32 0.5, %v828_v21 }
  0xa7   : > { %v659_v35 = vmul.f32 %v657_v27, %v1639_v2  ;;  %v777_v46 = vadd.f32 0.5, %v775_v28  ;;  %v670_v36 = vmul.f32 %v668_v23, %v1748_v41 }
  0xa8   : > { %v1226_v62 = vpop.eup %1225  ;;  %v722_v31 = vadd.f32 0.5, %v720_v9  ;;  %v705_v34 = vadd.f32 %v704_v5, %v703_v18  ;;  %v785_v59 = vadd.f32 %v784_v7, %v782_v25  ;;  %v832_v39 = vmul.f32 %v830_v30, %v1619_v47 }
  0xa9   : > { %v661_v33 = vadd.f32 %v659_v35, %v1642_v3  ;;  %v779_v19 = vmul.f32 %v777_v46, %v1633_v58  ;;  %v829_v22 = vmul.f32 0.5, %v1226_v62 }
  0xaa   : > { %v728_v51 = vadd.f32 %v722_v31, %v668_v23  ;;  %v707_v32 = vmul.f32 %v705_v34, %v1630_v57  ;;  %v786_v55 = vrot.slane %v785_v59, 2  ;;  %v1930_v49 = vadd.f32 %v832_v39, %v1610_v37 }
  0xab   : > { %v1933_v48 = vadd.f32 %v779_v19, %v1616_v44  ;;  %v831_v12 = vadd.f32 0.5, %v829_v22  ;;  %v663_v38 = vmul.f32 0.5, %v661_v33  ;;  %v724_v0 = vmul.f32 %v722_v31, %v1751_v54 }
  0xac   : > { %1227 = vrcp.f32 %v728_v51  ;;  %v709_v47 = vadd.f32 %v707_v32, %v1636_v61  ;;  %v787_v40 = vadd.f32 %v786_v55, %v785_v59  ;;  %v836_v24 = vmul.f32 %v1930_v49, %v1646_v15 }
  0xad   : > { %v783_v29 = vmul.f32 %v1933_v48, %v1657_v26  ;;  %v833_v13 = vmul.f32 %v831_v12, %v1633_v58  ;;  %1229 = vtanh.f32 %v663_v38  ;;  %vm735_vm0 = vweird.f32 %v728_v51 }
  0xae   : > { %v711_v52 = vmax.f32 %v709_v47, 0.0  ;;  %v788_v37 = vrot.slane %v787_v40, 1  ;;  %v838_v10 = vrot.slane %v836_v24, 4  ;;  %v739_v8 = vand.u32 2147483647, %v728_v51 }
  0xaf   : > { %v790_v60 = vrot.slane %v783_v29, 4  ;;  %v1942_v14 = vadd.f32 %v833_v13, %v1616_v44  ;;  %v741_v50 = vand.u32 2147483648, %v728_v51 }
  0xb0   : > { %v713_v56 = vmul.f32 %v711_v52, %v1639_v2  ;;  %v789_v15 = vadd.f32 %v788_v37, %v787_v40  ;;  %v839_v4 = vadd.f32 %v838_v10, %v836_v24  ;;  %vm740_vm3 = vcmp.eq.f32.partialorder %v739_v8, 8.507059e+37 }
  0xb1   : > { %v791_v53 = vadd.f32 %v790_v60, %v783_v29  ;;  %v837_v58 = vmul.f32 %v1942_v14, %v1657_v26  ;;  %v726_v26 = vadd.f32 %v724_v0, %v670_v36  ;;  %v742_v9 = vor.u32 1.1754944e-38, %v741_v50 }
  0xb2   : > { %v1228_v1 = vpop.eup %1227  ;;  %v715_v11 = vadd.f32 %v713_v56, %v1642_v3  ;;  %v796_v44 = vmul.f32 %v789_v15, %v1630_v57  ;;  %v840_v41 = vrot.slane %v839_v4, 2 }
  0xb3   : > { %v731_v6 = vmul.f32 %v1228_v1, %v728_v51  ;;  %v792_v16 = vrot.slane %v791_v53, 2  ;;  %v844_v54 = vrot.slane %v837_v58, 4  ;;  %vm736_vm1 = vweird.f32 %v1228_v1  ;;  %v1230_v25 = vpop.eup %1229 }
  0xb4   : > { %v717_v17 = vmul.f32 0.5, %v715_v11  ;;  %v798_v18 = vadd.f32 %v796_v44, %v1636_v61  ;;  %v841_v21 = vadd.f32 %v840_v41, %v839_v4  ;;  %vm737_vm2 = vmor %vm735_vm0, %vm736_vm1  ;;  %v667_v46 = vmul.f32 0.5, %v1230_v25 }
  0xb5   : > { %v732_v43 = vsub.f32 1.0, %v731_v6  ;;  %v793_v20 = vadd.f32 %v792_v16, %v791_v53  ;;  %v845_v23 = vadd.f32 %v844_v54, %v837_v58 }
  0xb6   : > { %1231 = vtanh.f32 %v717_v17  ;;  %v800_v28 = vmax.f32 %v798_v18, 0.0  ;;  %v842_v5 = vrot.slane %v841_v21, 1  ;;  %v669_v38 = vadd.f32 0.5, %v667_v46 }
  0xb7   : > { %v733_v27 = vmul.f32 %v1228_v1, %v732_v43  ;;  %v794_v7 = vrot.slane %v793_v20, 1  ;;  %v846_v30 = vrot.slane %v845_v23, 2 }
  0xb8   : > { %v802_v62 = vmul.f32 %v800_v28, %v1639_v2  ;;  %v843_v31 = vadd.f32 %v842_v5, %v841_v21  ;;  %v671_v50 = vmul.f32 %v669_v38, %v1872_v63 }
  0xb9   : > { %v734_v35 = vadd.f32 %v1228_v1, %v733_v27  ;;  %v795_v34 = vadd.f32 %v794_v7, %v793_v20  ;;  %v847_v59 = vadd.f32 %v846_v30, %v845_v23 }
  0xba   : > { %v804_v33 = vadd.f32 %v802_v62, %v1642_v3  ;;  %v850_v22 = vmul.f32 %v843_v31, %v1630_v57 }
  0xbb   : > { %v738_v39 = vsel %vm737_vm2, %v1228_v1, %v734_v35  ;;  %v797_v51 = vmul.f32 %v795_v34, %v1630_v57  ;;  %v848_v32 = vrot.slane %v847_v59, 1 }
  0xbc   : > { %v743_v19 = vsel %vm740_vm3, %v742_v9, %v738_v39  ;;  %v1232_v55 = vpop.eup %1231  ;;  %v852_v40 = vadd.f32 %v850_v22, %v1636_v61  ;;  %v806_v13 = vmul.f32 0.5, %v804_v33 }
  0xbd   : > { %v758_v12 = vmul.f32 %v743_v19, %v726_v26  ;;  %v721_v47 = vmul.f32 0.5, %v1232_v55  ;;  %v799_v24 = vadd.f32 %v797_v51, %v1636_v61  ;;  %v849_v29 = vadd.f32 %v848_v32, %v847_v59 }
  0xbe   : > { %v854_v37 = vmax.f32 %v852_v40, 0.0  ;;  %1233 = vtanh.f32 %v806_v13 }
  0xbf   : > { %760 = vst [vmem:[%s1866_s17 + $0x20] sm:$0xff] %v758_v12  ;;  %v723_v52 = vadd.f32 0.5, %v721_v47  ;;  %v801_v10 = vmax.f32 %v799_v24, 0.0  ;;  %v851_v60 = vmul.f32 %v849_v29, %v1630_v57 }
  0xc0   : > { %v856_v0 = vmul.f32 %v854_v37, %v1639_v2 }
  0xc1   : > { %v729_v36 = vadd.f32 %v723_v52, %v669_v38  ;;  %v803_v56 = vmul.f32 %v801_v10, %v1639_v2  ;;  %v853_v15 = vadd.f32 %v851_v60, %v1636_v61  ;;  %v725_v16 = vmul.f32 %v723_v52, %v1909_v42 }
  0xc2   : > { %v858_v1 = vadd.f32 %v856_v0, %v1642_v3 }
  0xc3   : > { %1235 = vrcp.f32 %v729_v36  ;;  %v805_v4 = vadd.f32 %v803_v56, %v1642_v3  ;;  %v855_v53 = vmax.f32 %v853_v15, 0.0  ;;  %vm749_vm4 = vweird.f32 %v729_v36 }
  0xc4   : > { %v860_v58 = vmul.f32 0.5, %v858_v1  ;;  %v1234_v11 = vpop.eup %1233  ;;  %v755_v54 = vand.u32 2147483648, %v729_v36  ;;  %v753_v18 = vand.u32 2147483647, %v729_v36  ;;  %v727_v63 = vadd.f32 %v725_v16, %v671_v50 }
  0xc5   : > { %v807_v6 = vmul.f32 0.5, %v805_v4  ;;  %v857_v8 = vmul.f32 %v855_v53, %v1639_v2  ;;  %v810_v43 = vmul.f32 0.5, %v1234_v11 }
  0xc6   : > { %1237 = vtanh.f32 %v860_v58  ;;  %vm754_vm7 = vcmp.eq.f32.partialorder %v753_v18, 8.507059e+37 }
  0xc7   : > { %v859_v57 = vadd.f32 %v857_v8, %v1642_v3  ;;  %1239 = vtanh.f32 %v807_v6  ;;  %v756_v3 = vor.u32 1.1754944e-38, %v755_v54  ;;  %v812_v20 = vadd.f32 0.5, %v810_v43 }
  0xc9   : > { %v1236_v44 = vpop.eup %1235  ;;  %v861_v61 = vmul.f32 0.5, %v859_v57  ;;  %v814_v39 = vmul.f32 %v812_v20, %v1919_v45 }
  0xca   : > { %v745_v41 = vmul.f32 %v1236_v44, %v729_v36  ;;  %vm750_vm5 = vweird.f32 %v1236_v44 }
  0xcb   : > { %1241 = vtanh.f32 %v861_v61  ;;  %vm751_vm6 = vmor %vm749_vm4, %vm750_vm5 }
  0xcc   : > { %v746_v17 = vsub.f32 1.0, %v745_v41  ;;  %v1238_v2 = vpop.eup %1237 }
  0xcd   : > { %v1240_v21 = vpop.eup %1239  ;;  %v864_v23 = vmul.f32 0.5, %v1238_v2 }
  0xce   : > { %v747_v25 = vmul.f32 %v1236_v44, %v746_v17  ;;  %v811_v27 = vmul.f32 0.5, %v1240_v21 }
  0xcf   : > { %v866_v42 = vadd.f32 0.5, %v864_v23 }
  0xd0   : > { %v748_v26 = vadd.f32 %v1236_v44, %v747_v25  ;;  %v813_v46 = vadd.f32 0.5, %v811_v27 }
  0xd1   : > { %v1242_v28 = vpop.eup %1241  ;;  %v872_v7 = vadd.f32 %v866_v42, %v812_v20  ;;  %v868_v33 = vmul.f32 %v866_v42, %v1930_v49 }
  0xd2   : > { %v752_v9 = vsel %vm751_vm6, %v1236_v44, %v748_v26  ;;  %v865_v30 = vmul.f32 0.5, %v1242_v28  ;;  %v815_v47 = vmul.f32 %v813_v46, %v1933_v48 }
  0xd3   : > { %v757_v5 = vsel %vm754_vm7, %v756_v3, %v752_v9  ;;  %1243 = vrcp.f32 %v872_v7  ;;  %v885_v19 = vand.u32 2147483648, %v872_v7  ;;  %vm879_vm8 = vweird.f32 %v872_v7 }
  0xd4   : > { %v759_v35 = vmul.f32 %v757_v5, %v727_v63  ;;  %v867_v62 = vadd.f32 0.5, %v865_v30  ;;  %v883_v51 = vand.u32 2147483647, %v872_v7  ;;  %v870_v12 = vadd.f32 %v868_v33, %v814_v39 }
  0xd5   : > { %v886_v38 = vor.u32 1.1754944e-38, %v885_v19 }
  0xd6   : > { %761 = vst [vmem:[%s1866_s17 + $0x28] sm:$0xff] %v759_v35  ;;  %v873_v31 = vadd.f32 %v867_v62, %v813_v46  ;;  %vm884_vm11 = vcmp.eq.f32.partialorder %v883_v51, 8.507059e+37  ;;  %v869_v45 = vmul.f32 %v867_v62, %v1942_v14 }
  0xd8   : > { %1245 = vrcp.f32 %v873_v31  ;;  %v899_v29 = vand.u32 2147483648, %v873_v31  ;;  %vm893_vm12 = vweird.f32 %v873_v31  ;;  %v897_v13 = vand.u32 2147483647, %v873_v31 }
  0xd9   : > { %v1244_v34 = vpop.eup %1243  ;;  %v871_v60 = vadd.f32 %v869_v45, %v815_v47 }
  0xda   : > { %v875_v59 = vmul.f32 %v1244_v34, %v872_v7  ;;  %vm880_vm9 = vweird.f32 %v1244_v34  ;;  %v900_v14 = vor.u32 1.1754944e-38, %v899_v29  ;;  %vm898_vm15 = vcmp.eq.f32.partialorder %v897_v13, 8.507059e+37 }
  0xdb   : > { %vm881_vm10 = vmor %vm879_vm8, %vm880_vm9 }
  0xdc   : > { %v876_v22 = vsub.f32 1.0, %v875_v59 }
  0xde   : > { %v1246_v32 = vpop.eup %1245  ;;  %v877_v55 = vmul.f32 %v1244_v34, %v876_v22 }
  0xdf   : > { %v889_v40 = vmul.f32 %v1246_v32, %v873_v31  ;;  %vm894_vm13 = vweird.f32 %v1246_v32 }
  0xe0   : > { %v878_v24 = vadd.f32 %v1244_v34, %v877_v55  ;;  %vm895_vm14 = vmor %vm893_vm12, %vm894_vm13 }
  0xe1   : > { %v890_v49 = vsub.f32 1.0, %v889_v40 }
  0xe2   : > { %v882_v52 = vsel %vm881_vm10, %v1244_v34, %v878_v24 }
  0xe3   : > { %v887_v37 = vsel %vm884_vm11, %v886_v38, %v882_v52  ;;  %v891_v10 = vmul.f32 %v1246_v32, %v890_v49 }
  0xe4   : > { %v902_v48 = vmul.f32 %v887_v37, %v870_v12 }
  0xe5   : > { %v892_v36 = vadd.f32 %v1246_v32, %v891_v10 }
  0xe6   : > { %904 = vst [vmem:[%s1866_s17 + $0x30] sm:$0xff] %v902_v48 }
  0xe7   : > { %v896_v0 = vsel %vm895_vm14, %v1246_v32, %v892_v36 }
  0xe8   : > { %v901_v56 = vsel %vm898_vm15, %v900_v14, %v896_v0 }
  0xe9   : > { %v903_v15 = vmul.f32 %v901_v56, %v871_v60 }
  0xeb   : > { %905 = vst [vmem:[%s1866_s17 + $0x38] sm:$0xff] %v903_v15 }
  0xec   : > { %1344 = shalt.err (!%p1341_p12)
}
  0xed   : > { %1096 = dma.vmem_to_hbm [thread:$0]  (%p1506_p9), %s923_s22, 1024, %s925_s11, %s907_s10  }
  0xee PF: > { %s936_s27 = sand.u32 1, %s1389_s19   ;;  %p1103_p13 = pnand %p1048_p3, %p1513_p11 }
  0xef   : > { %s937_s9 = scalar_lea.sflag [#allocation6], %s936_s27 }
  0xf0   : > { %p1104_p0 = pneg %p1103_p13 }
  0xf2   : > { %1384 = dma.done.wait (%p1104_p0), %s937_s9, 1024  }
  0xf3   : > { %1386 = vsyncadd (%p1104_p0), %s937_s9, 4294966272  ;;  %s31_s23 = sadd.s32 1, %s1409_s23   ;;  %s2044_s19 = smov %s1393_s20 }
  0xf4   : > { %p28_p1 = scmp.ge.s32.totalorder %s31_s23, 4   ;;  %s2045_s20 = smov %s1397_s21 }
  0xf5   : > { %s2046_s21 = smov %s1511_s6  ;;  %s2047_s22 = smov %s1405_s0 }
  0xf6   : > { %s2048_s0 = smov %s2050_s26  ;;  %30 = sbr.rel (!%p28_p1) target bundleno = 14 (0xe), region = 100 }
  0xfb   :  { %943 = vsyncpa [#allocation5], 1 }
  0xfc   :  { %945 = vsyncpa [#allocation5 + $0x1], 1 }
  0xfd   :  { %946 = vsyncpa [#allocation8], 1 }
  0xfe   :  { %948 = vsyncpa [#allocation8 + $0x1], 1 }
  0xff   :  { %949 = vsyncpa [#allocation6], 1 }
 0x100   :  { %951 = vsyncpa [#allocation6 + $0x1], 1 }

</bundles_post_ra>
